<compile_context>
chip_gen: v6e
topology: v6e:2x2x1
jax: 0.10.0
libtpu: 0.0.40
codegen_flags: <defaults>
</compile_context>

<pallas_src>
import functools

import jax
import jax.numpy as jnp
from jax import lax
from jax.experimental import pallas as pl
from jax.experimental.pallas import tpu as pltpu

N_ATOMS = 8
HIDDEN = 32
N_FRAMES = 32          # demo batch: 2 grid steps x 16 frames/step


def _partial_force_kernel(posi_ref, posk_ref, w1_ref, b1_ref, w2_ref, w21_ref,
                          pf_ref, ef_ref):
    # Per grid step (F frames, N atoms, L = F*N = 128 lanes):
    #   posi_ref : [3, L]       posi[c, f*N+i]    = r_i[c]   (frame f)
    #   posk_ref : [3, N, L]    posk[c, k, f*N+i] = r_k[c]   (frame f)
    #   w*_ref   : [H, 1, 1]    MLP params (w1, b1, w2, w2*w1 precomputed)
    #   pf_ref   : [3, N, L]    pf[c, k, f*N+i] = -dE_i/dr_k[c]
    #   ef_ref   : [4, L]       row 0 = per-atom energy (b2 excluded),
    #                           rows 1..3 = total force components
    N = posk_ref.shape[1]
    L = posi_ref.shape[1]

    pos_i = posi_ref[...]                                   # [3, L]
    pos_k = posk_ref[...]                                   # [3, N, L]
    d = pos_i[:, None, :] - pos_k                           # [3, N, L]  r_i - r_k
    r2 = jnp.sum(d * d, axis=0)                             # [N, L]     |r_i - r_k|^2

    # Vectorized pair MLP: one bulk tanh over the [H, N, L] slab (EUP);
    # H-reductions are plain adds over the leading dim (VPU).  No MXU anywhere.
    t = jnp.tanh(w1_ref[...] * r2[None] + b1_ref[...])      # [H, N, L]
    phi = jnp.sum(w2_ref[...] * t, axis=0)                  # [N, L]   phi (no b2)
    dphi = jnp.sum(w21_ref[...] * (1.0 - t * t), axis=0)    # [N, L]   phi'

    # Diagonal mask: sublane index k vs within-frame lane index i.
    k_idx = lax.broadcasted_iota(jnp.int32, (N, L), 0)
    i_idx = lax.broadcasted_iota(jnp.int32, (N, L), 1) % N
    is_diag = k_idx == i_idx
    off = jnp.logical_not(is_diag).astype(jnp.float32)      # [N, L]
    diag = is_diag.astype(jnp.float32)                      # [N, L]

    # Per-atom energy (b2 folded into wrapper): E_i = sum_{k != i} phi(d_ik^2).
    e_row = jnp.sum(phi * off, axis=0)                      # [L]   exact XLU sublane reduce

    # Pair forces pair[c,k,(f,i)] = 2*phi'(d_ik^2)*(r_i - r_k)[c]; diag is exactly 0.
    pair = (2.0 * dphi)[None] * d                           # [3, N, L]
    rowsum = jnp.sum(pair, axis=1, keepdims=True)           # [3, 1, L]  sum over k (XLU)
    # Diagonal correction: pf[i,i] = -sum_{k != i} pair[i,k].
    pf_ref[...] = pair - diag[None] * rowsum                # one lane-dense [3,N,128] store

    # Total force on atom a: sum_i pf[i,a] = -2 * rowsum_a, because the pair
    # slab is exactly antisymmetric in (i,k) (squared distances and negated
    # displacements are bit-exact), so the i-column-sum equals minus the k-row-sum.
    ef_ref[0:1, :] = e_row[None, :]
    ef_ref[1:4, :] = -2.0 * rowsum[:, 0, :]


@functools.partial(jax.jit, static_argnames=("frames_per_step",))
def _partial_force_batched(pos, w1, b1, w2, b2, frames_per_step):
    """pos: [B, N, 3] -> (per_atom_energy [B,N,1], partial_forces [B,N,N,3], forces [B,N,3])."""
    B, N, _ = pos.shape
    H = w1.shape[0]
    fps = frames_per_step
    G = -(-B // fps)                    # grid steps (frame blocks)
    Bp = G * fps                        # padded frame count
    L = fps * N                         # lanes per grid step (128 for N=8, fps=16)

    pos_p = jnp.pad(pos, ((0, Bp - B), (0, 0), (0, 0)))

    # Layout plumbing (fused under this jit):
    #   pos_i [3, Bp*N]:    (c, b*N+i)    -> r_i[c]     (no duplication)
    #   pos_k [3, N, Bp*N]: (c, k, b*N+i) -> r_k[c]     (pair-expanded)
    pos_i = jnp.transpose(pos_p, (2, 0, 1)).reshape(3, Bp * N)
    pos_k = jnp.broadcast_to(
        jnp.transpose(pos_p, (2, 1, 0))[:, :, :, None], (3, N, Bp, N)
    ).reshape(3, N, Bp * N)

    w1c = w1.reshape(H, 1, 1)
    b1c = b1.reshape(H, 1, 1)
    w2c = w2.reshape(H, 1, 1)
    w21c = (w2 * w1).reshape(H, 1, 1)   # w2*w1 precomputed for phi'

    bytes_accessed = 4 * (3 * Bp * N + 3 * N * Bp * N + 4 * H
                          + 3 * N * Bp * N + 4 * Bp * N)
    cost = pl.CostEstimate(flops=10 * H * N * N * Bp + 30 * N * N * Bp,
                           transcendentals=H * N * N * Bp,
                           bytes_accessed=bytes_accessed)

    param_spec = pl.BlockSpec((H, 1, 1), lambda g: (0, 0, 0))
    pf, ef = pl.pallas_call(
        _partial_force_kernel,
        grid=(G,),
        out_shape=(
            jax.ShapeDtypeStruct((3, N, Bp * N), jnp.float32),   # partial forces
            jax.ShapeDtypeStruct((4, Bp * N), jnp.float32),      # energy + forces
        ),
        in_specs=[
            pl.BlockSpec((3, L), lambda g: (0, g)),              # pos_i
            pl.BlockSpec((3, N, L), lambda g: (0, 0, g)),        # pos_k
            param_spec, param_spec, param_spec, param_spec,      # w1, b1, w2, w2*w1
        ],
        out_specs=(
            pl.BlockSpec((3, N, L), lambda g: (0, 0, g)),
            pl.BlockSpec((4, L), lambda g: (0, g)),
        ),
        compiler_params=pltpu.CompilerParams(
            dimension_semantics=("parallel",)),                  # megacore-shardable
        cost_estimate=cost,
    )(pos_i, pos_k, w1c, b1c, w2c, w21c)

    # Unpack to the module's output layout.
    partial_forces = jnp.transpose(pf.reshape(3, N, Bp, N), (2, 3, 1, 0))[:B]  # [B, N_i, N_k, 3]
    ef = ef.reshape(4, Bp, N)
    per_atom_energy = (ef[0] + (N - 1) * b2[0])[:B, :, None]                   # [B, N, 1]
    forces = jnp.transpose(ef[1:4], (1, 2, 0))[:B]                             # [B, N, 3]
    return per_atom_energy, partial_forces, forces


def partial_force_output(pos, w1, b1, w2, b2, frames_per_step=None):
    """Forward pass of PartialForceOutput for the synthetic pairwise MLP energy.

    pos: [N, 3] (single frame, as in the PyTorch module) or [B, N, 3] (batch).
    Returns dict with per_atom_energy, partial_forces, forces.
    """
    single = pos.ndim == 2
    pos_b = pos[None] if single else pos
    N = pos_b.shape[1]
    if frames_per_step is None:
        frames_per_step = max(1, (128 + N - 1) // N)   # make fps*N >= 128 lanes
    e, pf, f = _partial_force_batched(pos_b, w1, b1, w2, b2, frames_per_step)
    if single:
        e, pf, f = e[0], pf[0], f[0]
    return {"per_atom_energy": e, "partial_forces": pf, "forces": f}


# ---------------- pure-JAX reference (for verification only) ----------------
def _energy_ref(pos, w1, b1, w2, b2):
    diff = pos[:, None, :] - pos[None, :, :]
    d2 = jnp.sum(diff * diff, axis=-1)
    t = jnp.tanh(d2[..., None] * w1 + b1)
    phi = jnp.sum(t * w2, axis=-1) + b2[0]
    mask = 1.0 - jnp.eye(pos.shape[0], dtype=pos.dtype)
    return jnp.sum(phi * mask, axis=1)  # per-atom energy [N]


if __name__ == "__main__":
    key = jax.random.PRNGKey(0)
    k_pos, k_w1, k_b1, k_w2 = jax.random.split(key, 4)

    B, N, H = N_FRAMES, N_ATOMS, HIDDEN
    pos = jax.random.normal(k_pos, (B, N, 3), jnp.float32)
    w1 = 0.1 * jax.random.normal(k_w1, (H,), jnp.float32)
    b1 = 0.5 * jax.random.normal(k_b1, (H,), jnp.float32)
    w2 = 0.1 * jax.random.normal(k_w2, (H,), jnp.float32)
    b2 = jnp.array([0.01], jnp.float32)

    out = partial_force_output(pos, w1, b1, w2, b2)
    jax.block_until_ready(out)

    # verify against autodiff of the reference energy model (per frame)
    energy_fn = lambda p: _energy_ref(p, w1, b1, w2, b2)
    e_expected = jax.vmap(energy_fn)(pos)                    # [B, N]
    jac = jax.vmap(jax.jacrev(energy_fn))(pos)               # [B, N, N, 3]
    pf_expected = -jac
    f_expected = pf_expected.sum(axis=1)                     # forces = partial.sum(dim=0)

    # all in-kernel reductions are exact f32 (no MXU); only tanh-impl ulps differ
    atol = rtol = 1e-3
    assert jnp.allclose(out["per_atom_energy"][..., 0], e_expected, atol=atol, rtol=rtol)
    assert jnp.allclose(out["partial_forces"], pf_expected, atol=atol, rtol=rtol)
    assert jnp.allclose(out["forces"], f_expected, atol=atol, rtol=rtol)

    print("KERNEL_OK")
</pallas_src>

<mosaic_0001>
module attributes {stable_mosaic.version = 11 : i64} {
  func.func @_partial_force_kernel(%arg0: i32, %arg1: memref<3x128xf32, #tpu.memory_space<vmem>>, %arg2: memref<3x8x128xf32, #tpu.memory_space<vmem>>, %arg3: memref<32x1x1xf32, #tpu.memory_space<vmem>>, %arg4: memref<32x1x1xf32, #tpu.memory_space<vmem>>, %arg5: memref<32x1x1xf32, #tpu.memory_space<vmem>>, %arg6: memref<32x1x1xf32, #tpu.memory_space<vmem>>, %arg7: memref<3x8x128xf32, #tpu.memory_space<vmem>>, %arg8: memref<4x128xf32, #tpu.memory_space<vmem>>) attributes {dimension_semantics = [#tpu.dimension_semantics<parallel>], iteration_bounds = array<i64: 2>, scalar_prefetch = 0 : i64, scratch_operands = 0 : i64, tpu.core_type = #tpu.core_type<tc>, window_params = [{transform_indices = @transform_0, window_bounds = array<i64: 3, 128>}, {transform_indices = @transform_1, window_bounds = array<i64: 3, 8, 128>}, {pipeline_mode = #tpu.pipeline_mode<synchronous>, transform_indices = @transform_2, window_bounds = array<i64: 32, 1, 1>}, {pipeline_mode = #tpu.pipeline_mode<synchronous>, transform_indices = @transform_3, window_bounds = array<i64: 32, 1, 1>}, {pipeline_mode = #tpu.pipeline_mode<synchronous>, transform_indices = @transform_4, window_bounds = array<i64: 32, 1, 1>}, {pipeline_mode = #tpu.pipeline_mode<synchronous>, transform_indices = @transform_5, window_bounds = array<i64: 32, 1, 1>}, {transform_indices = @transform_6, window_bounds = array<i64: 3, 8, 128>}, {transform_indices = @transform_7, window_bounds = array<i64: 4, 128>}]} {
    %c0 = arith.constant 0 : index
    %c0_0 = arith.constant 0 : index
    %0 = vector.load %arg1[%c0, %c0_0] : memref<3x128xf32, #tpu.memory_space<vmem>>, vector<3x128xf32>
    %c0_1 = arith.constant 0 : index
    %c0_2 = arith.constant 0 : index
    %c0_3 = arith.constant 0 : index
    %1 = vector.load %arg2[%c0_1, %c0_2, %c0_3] : memref<3x8x128xf32, #tpu.memory_space<vmem>>, vector<3x8x128xf32>
    %2 = vector.shape_cast %0 : vector<3x128xf32> to vector<3x1x128xf32>
    %3 = vector.broadcast %2 : vector<3x1x128xf32> to vector<3x8x128xf32>
    %4 = arith.subf %3, %1 : vector<3x8x128xf32>
    %5 = arith.mulf %4, %4 : vector<3x8x128xf32>
    %cst = arith.constant dense<0.000000e+00> : vector<8x128xf32>
    %6 = vector.multi_reduction <add>, %5, %cst [0] : vector<3x8x128xf32> to vector<8x128xf32>
    %c0_4 = arith.constant 0 : index
    %c0_5 = arith.constant 0 : index
    %c0_6 = arith.constant 0 : index
    %7 = vector.load %arg3[%c0_4, %c0_5, %c0_6] : memref<32x1x1xf32, #tpu.memory_space<vmem>>, vector<32x1x1xf32>
    %8 = vector.shape_cast %6 : vector<8x128xf32> to vector<1x8x128xf32>
    %9 = vector.broadcast %7 : vector<32x1x1xf32> to vector<32x8x128xf32>
    %10 = vector.broadcast %8 : vector<1x8x128xf32> to vector<32x8x128xf32>
    %11 = arith.mulf %9, %10 : vector<32x8x128xf32>
    %c0_7 = arith.constant 0 : index
    %c0_8 = arith.constant 0 : index
    %c0_9 = arith.constant 0 : index
    %12 = vector.load %arg4[%c0_7, %c0_8, %c0_9] : memref<32x1x1xf32, #tpu.memory_space<vmem>>, vector<32x1x1xf32>
    %13 = vector.broadcast %12 : vector<32x1x1xf32> to vector<32x8x128xf32>
    %14 = arith.addf %11, %13 : vector<32x8x128xf32>
    %15 = math.tanh %14 : vector<32x8x128xf32>
    %c0_10 = arith.constant 0 : index
    %c0_11 = arith.constant 0 : index
    %c0_12 = arith.constant 0 : index
    %16 = vector.load %arg5[%c0_10, %c0_11, %c0_12] : memref<32x1x1xf32, #tpu.memory_space<vmem>>, vector<32x1x1xf32>
    %17 = vector.broadcast %16 : vector<32x1x1xf32> to vector<32x8x128xf32>
    %18 = arith.mulf %17, %15 : vector<32x8x128xf32>
    %cst_13 = arith.constant dense<0.000000e+00> : vector<8x128xf32>
    %19 = vector.multi_reduction <add>, %18, %cst_13 [0] : vector<32x8x128xf32> to vector<8x128xf32>
    %c0_14 = arith.constant 0 : index
    %c0_15 = arith.constant 0 : index
    %c0_16 = arith.constant 0 : index
    %20 = vector.load %arg6[%c0_14, %c0_15, %c0_16] : memref<32x1x1xf32, #tpu.memory_space<vmem>>, vector<32x1x1xf32>
    %21 = arith.mulf %15, %15 : vector<32x8x128xf32>
    %cst_17 = arith.constant 1.000000e+00 : f32
    %22 = vector.broadcast %cst_17 : f32 to vector<32x8x128xf32>
    %23 = arith.subf %22, %21 : vector<32x8x128xf32>
    %24 = vector.broadcast %20 : vector<32x1x1xf32> to vector<32x8x128xf32>
    %25 = arith.mulf %24, %23 : vector<32x8x128xf32>
    %cst_18 = arith.constant dense<0.000000e+00> : vector<8x128xf32>
    %26 = vector.multi_reduction <add>, %25, %cst_18 [0] : vector<32x8x128xf32> to vector<8x128xf32>
    %27 = tpu.iota {dimensions = array<i32: 0>} : vector<8x128xi32>
    %28 = tpu.iota {dimensions = array<i32: 1>} : vector<8x128xi32>
    %c8_i32 = arith.constant 8 : i32
    %c0_i32 = arith.constant 0 : i32
    %29 = arith.cmpi eq, %c8_i32, %c0_i32 : i32
    %c1_i32 = arith.constant 1 : i32
    %30 = arith.select %29, %c1_i32, %c8_i32 : i32
    %31 = vector.broadcast %30 : i32 to vector<8x128xi32>
    %32 = arith.remsi %28, %31 : vector<8x128xi32>
    %c0_i32_19 = arith.constant 0 : i32
    %33 = vector.broadcast %c0_i32_19 : i32 to vector<8x128xi32>
    %34 = arith.cmpi ne, %32, %33 : vector<8x128xi32>
    %c0_i32_20 = arith.constant 0 : i32
    %35 = vector.broadcast %c0_i32_20 : i32 to vector<8x128xi32>
    %36 = arith.cmpi slt, %32, %35 : vector<8x128xi32>
    %c0_i32_21 = arith.constant 0 : i32
    %37 = arith.cmpi slt, %30, %c0_i32_21 : i32
    %38 = vector.broadcast %37 : i1 to vector<8x128xi1>
    %39 = vector.broadcast %38 : vector<8x128xi1> to vector<8x128xi1>
    %40 = arith.xori %36, %39 : vector<8x128xi1>
    %41 = arith.andi %40, %34 : vector<8x128xi1>
    %42 = vector.broadcast %30 : i32 to vector<8x128xi32>
    %43 = arith.addi %32, %42 : vector<8x128xi32>
    %44 = arith.select %41, %43, %32 : vector<8x128xi1>, vector<8x128xi32>
    %45 = arith.cmpi eq, %27, %44 : vector<8x128xi32>
    %cst_22 = arith.constant dense<true> : vector<8x128xi1>
    %46 = arith.xori %45, %cst_22 : vector<8x128xi1>
    %47 = arith.extui %46 : vector<8x128xi1> to vector<8x128xi32>
    %48 = arith.sitofp %47 : vector<8x128xi32> to vector<8x128xf32>
    %49 = arith.extui %45 : vector<8x128xi1> to vector<8x128xi32>
    %50 = arith.sitofp %49 : vector<8x128xi32> to vector<8x128xf32>
    %51 = arith.mulf %19, %48 : vector<8x128xf32>
    %cst_23 = arith.constant dense<0.000000e+00> : vector<128xf32>
    %52 = vector.multi_reduction <add>, %51, %cst_23 [0] : vector<8x128xf32> to vector<128xf32>
    %cst_24 = arith.constant 2.000000e+00 : f32
    %53 = vector.broadcast %cst_24 : f32 to vector<8x128xf32>
    %54 = arith.mulf %53, %26 : vector<8x128xf32>
    %55 = vector.shape_cast %54 : vector<8x128xf32> to vector<1x8x128xf32>
    %56 = vector.broadcast %55 : vector<1x8x128xf32> to vector<3x8x128xf32>
    %57 = arith.mulf %56, %4 : vector<3x8x128xf32>
    %cst_25 = arith.constant dense<0.000000e+00> : vector<3x128xf32>
    %58 = vector.multi_reduction <add>, %57, %cst_25 [1] : vector<3x8x128xf32> to vector<3x128xf32>
    %59 = vector.shape_cast %58 : vector<3x128xf32> to vector<3x1x128xf32>
    %60 = vector.shape_cast %50 : vector<8x128xf32> to vector<1x8x128xf32>
    %61 = vector.broadcast %60 : vector<1x8x128xf32> to vector<3x8x128xf32>
    %62 = vector.broadcast %59 : vector<3x1x128xf32> to vector<3x8x128xf32>
    %63 = arith.mulf %61, %62 : vector<3x8x128xf32>
    %64 = arith.subf %57, %63 : vector<3x8x128xf32>
    %c0_26 = arith.constant 0 : index
    %c0_27 = arith.constant 0 : index
    %c0_28 = arith.constant 0 : index
    %65 = vector.load %arg7[%c0_26, %c0_27, %c0_28] : memref<3x8x128xf32, #tpu.memory_space<vmem>>, vector<3x8x128xf32>
    tpu.vector_store %arg7[%c0_26, %c0_27, %c0_28], %64 {strides = array<i32>} : memref<3x8x128xf32, #tpu.memory_space<vmem>>, vector<3x8x128xf32>,
    %66 = vector.shape_cast %52 : vector<128xf32> to vector<1x128xf32>
    %c0_29 = arith.constant 0 : index
    %c0_30 = arith.constant 0 : index
    %67 = vector.load %arg8[%c0_29, %c0_30] : memref<4x128xf32, #tpu.memory_space<vmem>>, vector<1x128xf32>
    tpu.vector_store %arg8[%c0_29, %c0_30], %66 {strides = array<i32>} : memref<4x128xf32, #tpu.memory_space<vmem>>, vector<1x128xf32>,
    %68 = vector.shape_cast %59 : vector<3x1x128xf32> to vector<3x128xf32>
    %cst_31 = arith.constant -2.000000e+00 : f32
    %69 = vector.broadcast %cst_31 : f32 to vector<3x128xf32>
    %70 = arith.mulf %69, %68 : vector<3x128xf32>
    %c1 = arith.constant 1 : index
    %c0_32 = arith.constant 0 : index
    %71 = vector.load %arg8[%c1, %c0_32] : memref<4x128xf32, #tpu.memory_space<vmem>>, vector<3x128xf32>
    tpu.vector_store %arg8[%c1, %c0_32], %70 {strides = array<i32>} : memref<4x128xf32, #tpu.memory_space<vmem>>, vector<3x128xf32>,
    return
  }
  func.func @transform_0(%arg0: i32) -> (i32, i32) {
    %c0_i32 = arith.constant 0 : i32
    %c0_i32_0 = arith.constant 0 : i32
    return %c0_i32, %arg0 : i32, i32
  }
  func.func @transform_1(%arg0: i32) -> (i32, i32, i32) {
    %c0_i32 = arith.constant 0 : i32
    %c0_i32_0 = arith.constant 0 : i32
    %c0_i32_1 = arith.constant 0 : i32
    return %c0_i32, %c0_i32_0, %arg0 : i32, i32, i32
  }
  func.func @transform_2(%arg0: i32) -> (i32, i32, i32) {
    %c0_i32 = arith.constant 0 : i32
    %c0_i32_0 = arith.constant 0 : i32
    %c0_i32_1 = arith.constant 0 : i32
    %c0_i32_2 = arith.constant 0 : i32
    return %c0_i32, %c0_i32_0, %c0_i32_1 : i32, i32, i32
  }
  func.func @transform_3(%arg0: i32) -> (i32, i32, i32) {
    %c0_i32 = arith.constant 0 : i32
    %c0_i32_0 = arith.constant 0 : i32
    %c0_i32_1 = arith.constant 0 : i32
    %c0_i32_2 = arith.constant 0 : i32
    return %c0_i32, %c0_i32_0, %c0_i32_1 : i32, i32, i32
  }
  func.func @transform_4(%arg0: i32) -> (i32, i32, i32) {
    %c0_i32 = arith.constant 0 : i32
    %c0_i32_0 = arith.constant 0 : i32
    %c0_i32_1 = arith.constant 0 : i32
    %c0_i32_2 = arith.constant 0 : i32
    return %c0_i32, %c0_i32_0, %c0_i32_1 : i32, i32, i32
  }
  func.func @transform_5(%arg0: i32) -> (i32, i32, i32) {
    %c0_i32 = arith.constant 0 : i32
    %c0_i32_0 = arith.constant 0 : i32
    %c0_i32_1 = arith.constant 0 : i32
    %c0_i32_2 = arith.constant 0 : i32
    return %c0_i32, %c0_i32_0, %c0_i32_1 : i32, i32, i32
  }
  func.func @transform_6(%arg0: i32) -> (i32, i32, i32) {
    %c0_i32 = arith.constant 0 : i32
    %c0_i32_0 = arith.constant 0 : i32
    %c0_i32_1 = arith.constant 0 : i32
    return %c0_i32, %c0_i32_0, %arg0 : i32, i32, i32
  }
  func.func @transform_7(%arg0: i32) -> (i32, i32) {
    %c0_i32 = arith.constant 0 : i32
    %c0_i32_0 = arith.constant 0 : i32
    return %c0_i32, %arg0 : i32, i32
  }
}

</mosaic_0001>

<bundles_post_ra>
// kernel: _partial_force_batched.1
= control target key start
LH: loop header
LB: loop body
LE: loop exit
PB: predicated region body
PF: predicated region fallthrough
CT: control target
= control target key end

     0   :  { %s2489_s24 = smov 0   ;;  %s2491_s25 = smov 0   ;;  %s3351_s0 = inlined_call_operand.vmem [shape: f32[3,256], index: 0, kind: input, shape index: {}]   ;;  %s3352_s1 = inlined_call_operand.vmem [shape: f32[3,8,256], index: 1, kind: input, shape index: {}]   ;;  %s3353_s2 = inlined_call_operand.vmem [shape: f32[32,1,1], index: 2, kind: input, shape index: {}]   ;;  %s3354_s3 = inlined_call_operand.vmem [shape: f32[32,1,1], index: 3, kind: input, shape index: {}]   ;;  %s3355_s4 = inlined_call_operand.vmem [shape: f32[32,1,1], index: 4, kind: input, shape index: {}]   ;;  %s3356_s5 = inlined_call_operand.vmem [shape: f32[32,1,1], index: 5, kind: input, shape index: {}]   ;;  %s3357_s6 = inlined_call_operand.vmem [shape: f32[3,8,256], index: 6, kind: output, shape index: {0}]   ;;  %s3358_s7 = inlined_call_operand.vmem [shape: f32[4,256], index: 7, kind: output, shape index: {1}]  }
   0x1   :  { %s2493_s26 = smov 0  }
   0x2 LB: > { %s2505_s27 = sadd.s32 4294967295, %s2443_s26   ;;  %s2508_s28 = sadd.s32 1, %s2443_s26   ;;  %s2443_s26 = sphi %s2493_s26, %s3382_s26   ;;  %s2439_s25 = sphi %s2491_s25, %s3381_s25   ;;  %s2435_s24 = sphi %s2489_s24, %s3380_s24  }
   0x3   : > { %s48_s29 = ssub.s32 %s2443_s26, %s2508_s28  ;;  %s51_s30 = sadd.s32 1, %s2439_s25 }
   0x4   : > { %p49_p0 = scmp.eq.s32.totalorder %s48_s29, 0  ;;  %p58_p1 = scmp.ne.s32.totalorder %s2439_s25, %s2435_s24 }
   0x5   : > { %p59_p2 = scmp.eq.s32.totalorder %s2443_s26, 0  ;;  %p172_p3 = scmp.eq.s32.totalorder %s2505_s27, 1 }
   0x6   : > { %s2518_s8 = scalar_select %p49_p0, %s2439_s25, %s51_s30  }
   0x7   : > { %p60_p4 = por %p59_p2, %p58_p1  ;;  %p2520_p5 = por %p172_p3, %p58_p1 }
   0x8   : > { %p2186_p6 = scmp.ge.s32.totalorder %s2443_s26, 2 }
   0xa   : > { %232 = sbr.rel (%p2186_p6) target bundleno = 21 (0x15), region = 32 }
   0xf   : > { %242 = sbr.rel (!%p60_p4) target bundleno = 21 (0x15), region = 40  ;;  %s244_s10 = sand.u32 (%p60_p4), 1, %s2439_s25  }
  0x10   : > { %s2187_s11 = sshll.u32 (%p60_p4), %s2443_s26, 3  ;;  %s2325_s12 = smul.u32 (%p60_p4), 24, %s244_s10 }
  0x11   : > { %s248_s15 = scalar_lea.vmem (%p60_p4), %s3352_s1, %s2187_s11 }
  0x12   : > { %v281_v0 = vld [vmem:[%s248_s15] sm:$0xff] (%p60_p4)  ;;  %v283_v1 = vld [vmem:[%s248_s15 + $0x10] sm:$0xff] (%p60_p4)  ;;  %s246_s16 = scalar_lea.vmem (%p60_p4), [#allocation2], %s2325_s12 }
  0x13   : > { %v285_v2 = vld [vmem:[%s248_s15 + $0x20] sm:$0xff] (%p60_p4)  ;;  %282 = vst [vmem:[%s246_s16] sm:$0xff] (%p60_p4), %v281_v0  ;;  %284 = vst [vmem:[%s246_s16 + $0x8] sm:$0xff] (%p60_p4), %v283_v1 }
  0x14   : > { %286 = vst [vmem:[%s246_s16 + $0x10] sm:$0xff] %v285_v2 }
  0x15 PF: > { %p2188_p7 = scmp.ge.s32.totalorder %s2443_s26, 1  ;;  %p291_p8 = scmp.lt.s32.totalorder %s2443_s26, 3 }
  0x17   : > { %p292_p9 = pnand %p2188_p7, %p291_p8 }
  0x19   : > { %295 = sbr.rel (%p292_p9) target bundleno = 438 (0x1b6), region = 78 }
  0x1e   : > { %v2194_v3 = vld [vmem:[%s3353_s2 + $0x2] ss:$0 sm:$0xff]  ;;  %v2192_v4 = vld [vmem:[%s3353_s2] ss:$0 sm:$0xff]  ;;  %v2445_v5 = vmov 0   ;;  %p336_p10 = scmp.lt.s32.totalorder %s2505_s27, 1 }
  0x1f   : > { %2356 = vset.pattern.permute.xlu1 %v2445_v5  ;;  %2355 = vset.pattern.permute.xlu0 %v2445_v5  ;;  %v2195_v6 = vld [vmem:[%s3353_s2 + $0x3] ss:$0 sm:$0xff]  ;;  %v2193_v7 = vld [vmem:[%s3353_s2 + $0x1] ss:$0 sm:$0xff]  ;;  %v2197_v8 = vld [vmem:[%s3353_s2 + $0x5] ss:$0 sm:$0xff] }
  0x20   : > { %596 = vperm.xlu1 %2356, %v2194_v3   ;;  %588 = vperm.xlu0 %2355, %v2192_v4   ;;  %v2196_v9 = vld [vmem:[%s3353_s2 + $0x4] ss:$0 sm:$0xff]  ;;  %v2199_v10 = vld [vmem:[%s3353_s2 + $0x7] ss:$0 sm:$0xff]  ;;  %v2198_v11 = vld [vmem:[%s3353_s2 + $0x6] ss:$0 sm:$0xff] }
  0x21   : > { %v2201_v12 = vld [vmem:[%s3353_s2 + $0x9] ss:$0 sm:$0xff]  ;;  %v2200_v13 = vld [vmem:[%s3353_s2 + $0x8] ss:$0 sm:$0xff]  ;;  %v2203_v14 = vld [vmem:[%s3353_s2 + $0xb] ss:$0 sm:$0xff] }
  0x22   : > { %v2202_v15 = vld [vmem:[%s3353_s2 + $0xa] ss:$0 sm:$0xff]  ;;  %v2205_v16 = vld [vmem:[%s3353_s2 + $0xd] ss:$0 sm:$0xff]  ;;  %v2204_v17 = vld [vmem:[%s3353_s2 + $0xc] ss:$0 sm:$0xff] }
  0x23   : > { %v2207_v18 = vld [vmem:[%s3353_s2 + $0xf] ss:$0 sm:$0xff]  ;;  %v2206_v19 = vld [vmem:[%s3353_s2 + $0xe] ss:$0 sm:$0xff]  ;;  %v2209_v20 = vld [vmem:[%s3353_s2 + $0x11] ss:$0 sm:$0xff] }
  0x24   : > { %600 = vperm.xlu1 %2356, %v2195_v6   ;;  %592 = vperm.xlu0 %2355, %v2193_v7   ;;  %v2208_v21 = vld [vmem:[%s3353_s2 + $0x10] ss:$0 sm:$0xff]  ;;  %v2211_v22 = vld [vmem:[%s3353_s2 + $0x13] ss:$0 sm:$0xff]  ;;  %v2210_v23 = vld [vmem:[%s3353_s2 + $0x12] ss:$0 sm:$0xff] }
  0x25   : > { %v2213_v24 = vld [vmem:[%s3353_s2 + $0x15] ss:$0 sm:$0xff]  ;;  %v2212_v25 = vld [vmem:[%s3353_s2 + $0x14] ss:$0 sm:$0xff]  ;;  %v2215_v26 = vld [vmem:[%s3353_s2 + $0x17] ss:$0 sm:$0xff] }
  0x26   : > { %v2214_v27 = vld [vmem:[%s3353_s2 + $0x16] ss:$0 sm:$0xff]  ;;  %v2217_v28 = vld [vmem:[%s3353_s2 + $0x19] ss:$0 sm:$0xff]  ;;  %v2216_v29 = vld [vmem:[%s3353_s2 + $0x18] ss:$0 sm:$0xff] }
  0x27   : > { %v2219_v30 = vld [vmem:[%s3353_s2 + $0x1b] ss:$0 sm:$0xff]  ;;  %v2218_v31 = vld [vmem:[%s3353_s2 + $0x1a] ss:$0 sm:$0xff]  ;;  %v2221_v32 = vld [vmem:[%s3353_s2 + $0x1d] ss:$0 sm:$0xff] }
  0x28   : > { %608 = vperm.xlu1 %2356, %v2197_v8   ;;  %604 = vperm.xlu0 %2355, %v2196_v9   ;;  %v2220_v33 = vld [vmem:[%s3353_s2 + $0x1c] ss:$0 sm:$0xff]  ;;  %v2223_v34 = vld [vmem:[%s3353_s2 + $0x1f] ss:$0 sm:$0xff]  ;;  %v2222_v35 = vld [vmem:[%s3353_s2 + $0x1e] ss:$0 sm:$0xff] }
  0x29   : > { %v2225_v36 = vld [vmem:[%s3354_s3 + $0x1] ss:$0 sm:$0xff]  ;;  %v2224_v37 = vld [vmem:[%s3354_s3] ss:$0 sm:$0xff]  ;;  %v2227_v38 = vld [vmem:[%s3354_s3 + $0x3] ss:$0 sm:$0xff] }
  0x2a   : > { %v2226_v39 = vld [vmem:[%s3354_s3 + $0x2] ss:$0 sm:$0xff]  ;;  %v2229_v40 = vld [vmem:[%s3354_s3 + $0x5] ss:$0 sm:$0xff]  ;;  %v2228_v41 = vld [vmem:[%s3354_s3 + $0x4] ss:$0 sm:$0xff] }
  0x2b   : > { %v2231_v42 = vld [vmem:[%s3354_s3 + $0x7] ss:$0 sm:$0xff]  ;;  %v2230_v43 = vld [vmem:[%s3354_s3 + $0x6] ss:$0 sm:$0xff]  ;;  %v2233_v44 = vld [vmem:[%s3354_s3 + $0x9] ss:$0 sm:$0xff] }
  0x2c   : > { %616 = vperm.xlu1 %2356, %v2199_v10   ;;  %612 = vperm.xlu0 %2355, %v2198_v11   ;;  %v2232_v45 = vld [vmem:[%s3354_s3 + $0x8] ss:$0 sm:$0xff]  ;;  %v2235_v46 = vld [vmem:[%s3354_s3 + $0xb] ss:$0 sm:$0xff]  ;;  %v2234_v47 = vld [vmem:[%s3354_s3 + $0xa] ss:$0 sm:$0xff] }
  0x2d   : > { %v2237_v48 = vld [vmem:[%s3354_s3 + $0xd] ss:$0 sm:$0xff]  ;;  %v2236_v49 = vld [vmem:[%s3354_s3 + $0xc] ss:$0 sm:$0xff]  ;;  %v2239_v50 = vld [vmem:[%s3354_s3 + $0xf] ss:$0 sm:$0xff] }
  0x2e   : > { %v2238_v51 = vld [vmem:[%s3354_s3 + $0xe] ss:$0 sm:$0xff]  ;;  %v2241_v52 = vld [vmem:[%s3354_s3 + $0x11] ss:$0 sm:$0xff]  ;;  %v2240_v53 = vld [vmem:[%s3354_s3 + $0x10] ss:$0 sm:$0xff] }
  0x2f   : > { %v2243_v54 = vld [vmem:[%s3354_s3 + $0x13] ss:$0 sm:$0xff]  ;;  %v2242_v55 = vld [vmem:[%s3354_s3 + $0x12] ss:$0 sm:$0xff]  ;;  %v2245_v56 = vld [vmem:[%s3354_s3 + $0x15] ss:$0 sm:$0xff] }
  0x30   : > { %624 = vperm.xlu1 %2356, %v2201_v12   ;;  %620 = vperm.xlu0 %2355, %v2200_v13   ;;  %v2244_v57 = vld [vmem:[%s3354_s3 + $0x14] ss:$0 sm:$0xff]  ;;  %v2247_v58 = vld [vmem:[%s3354_s3 + $0x17] ss:$0 sm:$0xff]  ;;  %v2246_v59 = vld [vmem:[%s3354_s3 + $0x16] ss:$0 sm:$0xff] }
  0x31   : > { %v2249_v60 = vld [vmem:[%s3354_s3 + $0x19] ss:$0 sm:$0xff]  ;;  %v2248_v61 = vld [vmem:[%s3354_s3 + $0x18] ss:$0 sm:$0xff]  ;;  %v2251_v62 = vld [vmem:[%s3354_s3 + $0x1b] ss:$0 sm:$0xff] }
  0x32   : > { %v2250_v63 = vld [vmem:[%s3354_s3 + $0x1a] ss:$0 sm:$0xff]  ;;  %v2253_v0 = vld [vmem:[%s3354_s3 + $0x1d] ss:$0 sm:$0xff]  ;;  %v2252_v1 = vld [vmem:[%s3354_s3 + $0x1c] ss:$0 sm:$0xff] }
  0x33   : > { %v2255_v2 = vld [vmem:[%s3354_s3 + $0x1f] ss:$0 sm:$0xff]  ;;  %v2254_v3 = vld [vmem:[%s3354_s3 + $0x1e] ss:$0 sm:$0xff]  ;;  %v2257_v6 = vld [vmem:[%s3355_s4 + $0x1] ss:$0 sm:$0xff] }
  0x34   : > { %632 = vperm.xlu1 %2356, %v2203_v14   ;;  %628 = vperm.xlu0 %2355, %v2202_v15   ;;  %v2256_v7 = vld [vmem:[%s3355_s4] ss:$0 sm:$0xff]  ;;  %v2259_v10 = vld [vmem:[%s3355_s4 + $0x3] ss:$0 sm:$0xff]  ;;  %v2258_v11 = vld [vmem:[%s3355_s4 + $0x2] ss:$0 sm:$0xff] }
  0x35   : > { %v2261_v14 = vld [vmem:[%s3355_s4 + $0x5] ss:$0 sm:$0xff]  ;;  %v2260_v15 = vld [vmem:[%s3355_s4 + $0x4] ss:$0 sm:$0xff]  ;;  %s2896_s30 = scalar_select %p336_p10, %s2505_s27, 1  ;;  %vm2447_vm1 = vmmov 1  }
  0x36   : > { %s298_s10 = sand.u32 1, %s2435_s24   ;;  %vm2028_vm3 = vcmask 1041409   ;;  %vm2030_vm4 = vcmask 1042434  }
  0x37   : > { %s2189_s14 = sshll.u32 %s2896_s30, 2  ;;  %s2943_s11 = smul.u32 24, %s298_s10 }
  0x38   : > { %640 = vperm.xlu1 %2356, %v2205_v16   ;;  %636 = vperm.xlu0 %2355, %v2204_v17   ;;  %s339_s17 = scalar_lea.vmem %s3351_s0, %s2189_s14  ;;  %s343_s18 = scalar_lea.vmem %s3358_s7, %s2189_s14 }
  0x39   : > { %s300_s20 = scalar_lea.vmem [#allocation2], %s2943_s11  ;;  %s329_s19 = scalar_lea.vmem [#allocation3], %s2943_s11 }
  0x3a   : > { %s2322_s30 = sshll.u32 (%p2520_p5), %s2505_s27, 3 }
  0x3b   : > { %s2046_s21 = scalar_lea.vmem (%p2520_p5), %s3357_s6, %s2322_s30 }
  0x3c   : > { %648 = vperm.xlu1 %2356, %v2207_v18   ;;  %644 = vperm.xlu0 %2355, %v2206_v19   ;;  %v2263_v18 = vld [vmem:[%s3355_s4 + $0x7] ss:$0 sm:$0xff]  ;;  %v2262_v19 = vld [vmem:[%s3355_s4 + $0x6] ss:$0 sm:$0xff] }
  0x40   : > { %656 = vperm.xlu1 %2356, %v2209_v20   ;;  %652 = vperm.xlu0 %2355, %v2208_v21  }
  0x44   : > { %664 = vperm.xlu1 %2356, %v2211_v22   ;;  %660 = vperm.xlu0 %2355, %v2210_v23   ;;  %v2265_v22 = vld [vmem:[%s3355_s4 + $0x9] ss:$0 sm:$0xff]  ;;  %v2264_v23 = vld [vmem:[%s3355_s4 + $0x8] ss:$0 sm:$0xff] }
  0x48   : > { %672 = vperm.xlu1 %2356, %v2213_v24   ;;  %668 = vperm.xlu0 %2355, %v2212_v25  }
  0x4c   : > { %680 = vperm.xlu1 %2356, %v2215_v26   ;;  %676 = vperm.xlu0 %2355, %v2214_v27   ;;  %v2267_v26 = vld [vmem:[%s3355_s4 + $0xb] ss:$0 sm:$0xff]  ;;  %v2266_v27 = vld [vmem:[%s3355_s4 + $0xa] ss:$0 sm:$0xff] }
  0x50   : > { %688 = vperm.xlu1 %2356, %v2217_v28   ;;  %684 = vperm.xlu0 %2355, %v2216_v29  }
  0x54   : > { %696 = vperm.xlu1 %2356, %v2219_v30   ;;  %692 = vperm.xlu0 %2355, %v2218_v31   ;;  %v2269_v30 = vld [vmem:[%s3355_s4 + $0xd] ss:$0 sm:$0xff]  ;;  %v2268_v31 = vld [vmem:[%s3355_s4 + $0xc] ss:$0 sm:$0xff] }
  0x58   : > { %704 = vperm.xlu1 %2356, %v2221_v32   ;;  %700 = vperm.xlu0 %2355, %v2220_v33  }
  0x5c   : > { %712 = vperm.xlu1 %2356, %v2223_v34   ;;  %708 = vperm.xlu0 %2355, %v2222_v35   ;;  %v2271_v34 = vld [vmem:[%s3355_s4 + $0xf] ss:$0 sm:$0xff]  ;;  %v2270_v35 = vld [vmem:[%s3355_s4 + $0xe] ss:$0 sm:$0xff] }
  0x60   : > { %944 = vperm.xlu1 %2356, %v2225_v36   ;;  %940 = vperm.xlu0 %2355, %v2224_v37  }
  0x64   : > { %952 = vperm.xlu1 %2356, %v2227_v38   ;;  %948 = vperm.xlu0 %2355, %v2226_v39   ;;  %v2273_v38 = vld [vmem:[%s3355_s4 + $0x11] ss:$0 sm:$0xff]  ;;  %v2272_v39 = vld [vmem:[%s3355_s4 + $0x10] ss:$0 sm:$0xff] }
  0x68   : > { %960 = vperm.xlu1 %2356, %v2229_v40   ;;  %956 = vperm.xlu0 %2355, %v2228_v41  }
  0x6c   : > { %968 = vperm.xlu1 %2356, %v2231_v42   ;;  %964 = vperm.xlu0 %2355, %v2230_v43   ;;  %v2275_v42 = vld [vmem:[%s3355_s4 + $0x13] ss:$0 sm:$0xff]  ;;  %v2274_v43 = vld [vmem:[%s3355_s4 + $0x12] ss:$0 sm:$0xff] }
  0x70   : > { %976 = vperm.xlu1 %2356, %v2233_v44   ;;  %972 = vperm.xlu0 %2355, %v2232_v45  }
  0x74   : > { %984 = vperm.xlu1 %2356, %v2235_v46   ;;  %980 = vperm.xlu0 %2355, %v2234_v47   ;;  %v2277_v46 = vld [vmem:[%s3355_s4 + $0x15] ss:$0 sm:$0xff]  ;;  %v2276_v47 = vld [vmem:[%s3355_s4 + $0x14] ss:$0 sm:$0xff] }
  0x78   : > { %992 = vperm.xlu1 %2356, %v2237_v48   ;;  %988 = vperm.xlu0 %2355, %v2236_v49  }
  0x7c   : > { %1000 = vperm.xlu1 %2356, %v2239_v50   ;;  %996 = vperm.xlu0 %2355, %v2238_v51   ;;  %v2279_v50 = vld [vmem:[%s3355_s4 + $0x17] ss:$0 sm:$0xff]  ;;  %v2278_v51 = vld [vmem:[%s3355_s4 + $0x16] ss:$0 sm:$0xff] }
  0x80   : > { %1008 = vperm.xlu1 %2356, %v2241_v52   ;;  %1004 = vperm.xlu0 %2355, %v2240_v53  }
  0x84   : > { %1016 = vperm.xlu1 %2356, %v2243_v54   ;;  %1012 = vperm.xlu0 %2355, %v2242_v55   ;;  %v2281_v54 = vld [vmem:[%s3355_s4 + $0x19] ss:$0 sm:$0xff]  ;;  %v2280_v55 = vld [vmem:[%s3355_s4 + $0x18] ss:$0 sm:$0xff] }
  0x88   : > { %1024 = vperm.xlu1 %2356, %v2245_v56   ;;  %1020 = vperm.xlu0 %2355, %v2244_v57  }
  0x8c   : > { %1032 = vperm.xlu1 %2356, %v2247_v58   ;;  %1028 = vperm.xlu0 %2355, %v2246_v59   ;;  %v2283_v58 = vld [vmem:[%s3355_s4 + $0x1b] ss:$0 sm:$0xff]  ;;  %v2282_v59 = vld [vmem:[%s3355_s4 + $0x1a] ss:$0 sm:$0xff] }
  0x90   : > { %1040 = vperm.xlu1 %2356, %v2249_v60   ;;  %1036 = vperm.xlu0 %2355, %v2248_v61  }
  0x94   : > { %1048 = vperm.xlu1 %2356, %v2251_v62   ;;  %1044 = vperm.xlu0 %2355, %v2250_v63   ;;  %v2289_v62 = vld [vmem:[%s3356_s5 + $0x1] ss:$0 sm:$0xff]  ;;  %v2288_v63 = vld [vmem:[%s3356_s5] ss:$0 sm:$0xff] }
  0x98   : > { %1056 = vperm.xlu1 %2356, %v2253_v0   ;;  %1052 = vperm.xlu0 %2355, %v2252_v1  }
  0x9b   : > { %v2724_v4 = vpop.permute.xlu1 %596  ;;  %v2726_v5 = vpop.permute.xlu0 %588 }
  0x9c   : > { %1064 = vperm.xlu1 %2356, %v2255_v2   ;;  %1060 = vperm.xlu0 %2355, %v2254_v3   ;;  %v2291_v2 = vld [vmem:[%s3356_s5 + $0x3] ss:$0 sm:$0xff]  ;;  %v2290_v3 = vld [vmem:[%s3356_s5 + $0x2] ss:$0 sm:$0xff] }
  0x9f   : > { %v2734_v8 = vpop.permute.xlu1 %600  ;;  %v2736_v9 = vpop.permute.xlu0 %592 }
  0xa0   : > { %1328 = vperm.xlu1 %2356, %v2257_v6   ;;  %1324 = vperm.xlu0 %2355, %v2256_v7  }
  0xa3   : > { %v2744_v12 = vpop.permute.xlu1 %608  ;;  %v2746_v13 = vpop.permute.xlu0 %604 }
  0xa4   : > { %1336 = vperm.xlu1 %2356, %v2259_v10   ;;  %1332 = vperm.xlu0 %2355, %v2258_v11   ;;  %v2293_v10 = vld [vmem:[%s3356_s5 + $0x5] ss:$0 sm:$0xff]  ;;  %v2292_v11 = vld [vmem:[%s3356_s5 + $0x4] ss:$0 sm:$0xff] }
  0xa7   : > { %v2754_v16 = vpop.permute.xlu1 %616  ;;  %v2756_v17 = vpop.permute.xlu0 %612 }
  0xa8   : > { %1344 = vperm.xlu1 %2356, %v2261_v14   ;;  %1340 = vperm.xlu0 %2355, %v2260_v15  }
  0xab   : > { %v2764_v20 = vpop.permute.xlu1 %624  ;;  %v2766_v21 = vpop.permute.xlu0 %620 }
  0xac   : > { %1352 = vperm.xlu1 %2356, %v2263_v18   ;;  %1348 = vperm.xlu0 %2355, %v2262_v19   ;;  %v2295_v18 = vld [vmem:[%s3356_s5 + $0x7] ss:$0 sm:$0xff]  ;;  %v2294_v19 = vld [vmem:[%s3356_s5 + $0x6] ss:$0 sm:$0xff] }
  0xaf   : > { %v2774_v24 = vpop.permute.xlu1 %632  ;;  %v2776_v25 = vpop.permute.xlu0 %628 }
  0xb0   : > { %1360 = vperm.xlu1 %2356, %v2265_v22   ;;  %1356 = vperm.xlu0 %2355, %v2264_v23  }
  0xb3   : > { %v2784_v28 = vpop.permute.xlu1 %640  ;;  %v2786_v29 = vpop.permute.xlu0 %636 }
  0xb4   : > { %1368 = vperm.xlu1 %2356, %v2267_v26   ;;  %1364 = vperm.xlu0 %2355, %v2266_v27   ;;  %v2446_v26 = vmov 1966171168  }
  0xb5   : > { %v358_v27 = vunpack.c.l.s4 %v2446_v26 }
  0xb7   : > { %v2794_v32 = vpop.permute.xlu1 %648  ;;  %v2796_v33 = vpop.permute.xlu0 %644 }
  0xb8   : > { %1376 = vperm.xlu1 %2356, %v2269_v30   ;;  %1372 = vperm.xlu0 %2355, %v2268_v31   ;;  %v3359_v30 = vlaneseq  ;;  %v2297_v31 = vld [vmem:[%s3356_s5 + $0x9] ss:$0 sm:$0xff] }
  0xbb   : > { %v2804_v36 = vpop.permute.xlu1 %656  ;;  %v2806_v37 = vpop.permute.xlu0 %652 }
  0xbc   : > { %1384 = vperm.xlu1 %2356, %v2271_v34   ;;  %1380 = vperm.xlu0 %2355, %v2270_v35   ;;  %v2296_v34 = vld [vmem:[%s3356_s5 + $0x8] ss:$0 sm:$0xff] }
  0xbf   : > { %v2814_v40 = vpop.permute.xlu1 %664  ;;  %v2816_v41 = vpop.permute.xlu0 %660 }
  0xc0   : > { %1392 = vperm.xlu1 %2356, %v2273_v38   ;;  %1388 = vperm.xlu0 %2355, %v2272_v39   ;;  %v2191_v39 = vld.sshfl [vmem:[%s339_s17] sm:$0x13 pattern:$0x75316420] }
  0xc3   : > { %v2824_v44 = vpop.permute.xlu1 %672  ;;  %v2826_v45 = vpop.permute.xlu0 %668 }
  0xc4   : > { %1400 = vperm.xlu1 %2356, %v2275_v42   ;;  %1396 = vperm.xlu0 %2355, %v2274_v43   ;;  %v359_v42 = vunpack.c.0.s8 %v358_v27  ;;  %v2929_v43 = vshrl.u32 %v3359_v30, 7  ;;  %v345_v27 = vld [vmem:[%s300_s20] sm:$0xff] }
  0xc6   : > { %3367 = vst [vmem:[#allocation6_spill] sm:$0xff] %v2929_v43 }
  0xc7   : > { %v2834_v48 = vpop.permute.xlu1 %680  ;;  %v2836_v49 = vpop.permute.xlu0 %676 }
  0xc8   : > { %1408 = vperm.xlu1 %2356, %v2277_v46   ;;  %1404 = vperm.xlu0 %2355, %v2276_v47   ;;  %v2299_v46 = vld [vmem:[%s3356_s5 + $0xb] ss:$0 sm:$0xff]  ;;  %v2298_v47 = vld [vmem:[%s3356_s5 + $0xa] ss:$0 sm:$0xff] }
  0xcb   : > { %v2844_v52 = vpop.permute.xlu1 %688  ;;  %v2846_v53 = vpop.permute.xlu0 %684 }
  0xcc   : > { %1416 = vperm.xlu1 %2356, %v2279_v50   ;;  %1412 = vperm.xlu0 %2355, %v2278_v51  }
  0xcf   : > { %v2854_v56 = vpop.permute.xlu1 %696  ;;  %v2856_v57 = vpop.permute.xlu0 %692 }
  0xd0   : > { %1424 = vperm.xlu1 %2356, %v2281_v54   ;;  %1420 = vperm.xlu0 %2355, %v2280_v55   ;;  %v356_v54 = vcombine.high %v2191_v39, %v2191_v39  ;;  %v362_v55 = vsub.s32 %v359_v42, %v2929_v43  ;;  %v346_v42 = vld [vmem:[%s300_s20 + $0x8] sm:$0xff] }
  0xd3   : > { %v2864_v60 = vpop.permute.xlu1 %704  ;;  %v2866_v61 = vpop.permute.xlu0 %700 }
  0xd4   : > { %3365 = vst [vmem:[#allocation4_spill] sm:$0xff] %v2864_v60  ;;  %3366 = vst [vmem:[#allocation5_spill] sm:$0xff] %v2866_v61  ;;  %1432 = vperm.xlu1 %2356, %v2283_v58   ;;  %1428 = vperm.xlu0 %2355, %v2282_v59   ;;  %v2301_v58 = vld [vmem:[%s3356_s5 + $0xd] ss:$0 sm:$0xff]  ;;  %v2300_v59 = vld [vmem:[%s3356_s5 + $0xc] ss:$0 sm:$0xff] }
  0xd7   : > { %v2874_v0 = vpop.permute.xlu1 %712  ;;  %v2876_v1 = vpop.permute.xlu0 %708 }
  0xd8   : > { %1775 = vperm.xlu1 %2356, %v2289_v62   ;;  %1771 = vperm.xlu0 %2355, %v2288_v63  }
  0xdb   : > { %v2885_v6 = vpop.permute.xlu1 %944  ;;  %v2887_v7 = vpop.permute.xlu0 %940 }
  0xdc   : > { %1783 = vperm.xlu1 %2356, %v2291_v2   ;;  %1779 = vperm.xlu0 %2355, %v2290_v3   ;;  %v363_v2 = vrot.slane %v2191_v39, %v362_v55  ;;  %v370_v3 = vrot.slane %v356_v54, %v362_v55 }
  0xdf   : > { %v2898_v14 = vpop.permute.xlu1 %952  ;;  %v2900_v15 = vpop.permute.xlu0 %948 }
  0xe0   : > { %1791 = vperm.xlu1 %2356, %v2293_v10   ;;  %1787 = vperm.xlu0 %2355, %v2292_v11   ;;  %v374_v10 = vsub.s32 0, %v2929_v43  ;;  %v2303_v11 = vld [vmem:[%s3356_s5 + $0xf] ss:$0 sm:$0xff] }
  0xe2   : > { %v379_v39 = vrot.slane %v370_v3, %v374_v10  ;;  %v347_v3 = vld [vmem:[%s300_s20 + $0x10] sm:$0xff] }
  0xe3   : > { %v2909_v22 = vpop.permute.xlu1 %960  ;;  %v2911_v23 = vpop.permute.xlu0 %956 }
  0xe4   : > { %1799 = vperm.xlu1 %2356, %v2295_v18   ;;  %1795 = vperm.xlu0 %2355, %v2294_v19   ;;  %v2302_v18 = vld [vmem:[%s3356_s5 + $0xe] ss:$0 sm:$0xff] }
  0xe7   : > { %v2924_v35 = vpop.permute.xlu1 %968  ;;  %v2926_v38 = vpop.permute.xlu0 %964 }
  0xe8   : > { %1807 = vperm.xlu1 %2356, %v2297_v31   ;;  %1803 = vperm.xlu0 %2355, %v2296_v34   ;;  %v371_v31 = vcombine.high %v363_v2, %v363_v2  ;;  %v375_v34 = vrot.slane %v363_v2, %v374_v10  ;;  %v2979_v2 = vsub.f32 %v379_v39, %v346_v42  ;;  %v2308_v39 = vld [vmem:[%s3356_s5 + $0x14] ss:$0 sm:$0xff] }
  0xea   : > { %3369 = vst [vmem:[#allocation8_spill] sm:$0xff] %v2979_v2 }
  0xeb   : > { %v2938_v50 = vpop.permute.xlu1 %976  ;;  %v2940_v51 = vpop.permute.xlu0 %972 }
  0xec   : > { %1815 = vperm.xlu1 %2356, %v2299_v46   ;;  %1811 = vperm.xlu0 %2355, %v2298_v47   ;;  %v2305_v46 = vld [vmem:[%s3356_s5 + $0x11] ss:$0 sm:$0xff]  ;;  %v2304_v47 = vld [vmem:[%s3356_s5 + $0x10] ss:$0 sm:$0xff] }
  0xef   : > { %v2951_v62 = vpop.permute.xlu1 %984  ;;  %v2953_v63 = vpop.permute.xlu0 %980 }
  0xf0   : > { %1823 = vperm.xlu1 %2356, %v2301_v58   ;;  %1819 = vperm.xlu0 %2355, %v2300_v59   ;;  %v383_v58 = vrot.slane %v371_v31, %v374_v10  ;;  %v2977_v59 = vsub.f32 %v375_v34, %v345_v27  ;;  %v391_v31 = vmul.f32 %v2979_v2, %v2979_v2  ;;  %v2309_v34 = vld [vmem:[%s3356_s5 + $0x15] ss:$0 sm:$0xff] }
  0xf2   : > { %3368 = vst [vmem:[#allocation7_spill] sm:$0xff] %v2977_v59  ;;  %v2991_v10 = vsub.f32 %v383_v58, %v347_v3  ;;  %v390_v27 = vmul.f32 %v2977_v59, %v2977_v59  ;;  %v2311_v3 = vld [vmem:[%s3356_s5 + $0x17] ss:$0 sm:$0xff] }
  0xf3   : > { %v2962_v19 = vpop.permute.xlu1 %992  ;;  %v2964_v26 = vpop.permute.xlu0 %988 }
  0xf4   : > { %1831 = vperm.xlu1 %2356, %v2303_v11   ;;  %1827 = vperm.xlu0 %2355, %v2302_v18   ;;  %v2307_v11 = vld [vmem:[%s3356_s5 + $0x13] ss:$0 sm:$0xff]  ;;  %v2306_v18 = vld [vmem:[%s3356_s5 + $0x12] ss:$0 sm:$0xff]  ;;  %3370 = vst [vmem:[#allocation9_spill] sm:$0xff] %v2991_v10  ;;  %v393_v58 = vadd.f32 %v391_v31, %v390_v27 }
  0xf5   : > { %v2313_v27 = vld [vmem:[%s3356_s5 + $0x19] ss:$0 sm:$0xff]  ;;  %v2312_v31 = vld [vmem:[%s3356_s5 + $0x18] ss:$0 sm:$0xff] }
  0xf7   : > { %v2973_v54 = vpop.permute.xlu1 %1000  ;;  %v2975_v55 = vpop.permute.xlu0 %996 }
  0xf8   : > { %1839 = vperm.xlu1 %2356, %v2305_v46   ;;  %1835 = vperm.xlu0 %2355, %v2304_v47   ;;  %v392_v47 = vmul.f32 %v2991_v10, %v2991_v10 }
  0xfa   : > { %v3019_v59 = vadd.f32 %v393_v58, %v392_v47 }
  0xfb   : > { %v2987_v30 = vpop.permute.xlu1 %1008  ;;  %v2989_v43 = vpop.permute.xlu0 %1004 }
  0xfc   : > { %1847 = vperm.xlu1 %2356, %v2307_v11   ;;  %1843 = vperm.xlu0 %2355, %v2306_v18   ;;  %v2310_v11 = vld [vmem:[%s3356_s5 + $0x16] ss:$0 sm:$0xff]  ;;  %v715_v47 = vmul.f32 %v2726_v5, %v3019_v59  ;;  %v718_v60 = vmul.f32 %v2734_v8, %v3019_v59  ;;  %v2316_v8 = vld [vmem:[%s3356_s5 + $0x1c] ss:$0 sm:$0xff] }
  0xff   : > { %v3003_v42 = vpop.permute.xlu1 %1016  ;;  %v3005_v46 = vpop.permute.xlu0 %1012 }
 0x100   : > { %1855 = vperm.xlu1 %2356, %v2309_v34   ;;  %1851 = vperm.xlu0 %2355, %v2308_v39   ;;  %v716_v34 = vmul.f32 %v2736_v9, %v3019_v59  ;;  %v1067_v9 = vadd.f32 %v2887_v7, %v715_v47 }
 0x102   : > { %v1068_v58 = vadd.f32 %v2885_v6, %v716_v34  ;;  %v717_v6 = vmul.f32 %v2724_v4, %v3019_v59  ;;  %v720_v34 = vmul.f32 %v2744_v12, %v3019_v59  ;;  %v2318_v12 = vld [vmem:[%s3356_s5 + $0x1e] ss:$0 sm:$0xff] }
 0x103   : > { %v3015_v18 = vpop.permute.xlu1 %1024  ;;  %v3017_v2 = vpop.permute.xlu0 %1020 }
 0x104   : > { %1863 = vperm.xlu1 %2356, %v2311_v3   ;;  %1859 = vperm.xlu0 %2355, %v2310_v11   ;;  %v2315_v3 = vld [vmem:[%s3356_s5 + $0x1b] ss:$0 sm:$0xff]  ;;  %v2314_v11 = vld [vmem:[%s3356_s5 + $0x1a] ss:$0 sm:$0xff]  ;;  %2357 = vtanh.f32 %v1068_v58  ;;  %v1069_v7 = vadd.f32 %v2900_v15, %v717_v6  ;;  %v2284_v58 = vld [vmem:[%s3355_s4 + $0x1c] ss:$0 sm:$0xff] }
 0x105   : > { %2359 = vtanh.f32 %v1067_v9  ;;  %v2285_v6 = vld [vmem:[%s3355_s4 + $0x1d] ss:$0 sm:$0xff] }
 0x107   : > { %v3029_v39 = vpop.permute.xlu1 %1032  ;;  %v3031_v10 = vpop.permute.xlu0 %1028 }
 0x108   : > { %1871 = vperm.xlu1 %2356, %v2313_v27   ;;  %1867 = vperm.xlu0 %2355, %v2312_v31   ;;  %v1070_v27 = vadd.f32 %v2898_v14, %v718_v60  ;;  %v2317_v31 = vld [vmem:[%s3356_s5 + $0x1d] ss:$0 sm:$0xff]  ;;  %v719_v60 = vmul.f32 %v2746_v13, %v3019_v59  ;;  %v1072_v14 = vadd.f32 %v2909_v22, %v720_v34 }
 0x109   : > { %v721_v22 = vmul.f32 %v2756_v17, %v3019_v59 }
 0x10a   : > { %2361 = vtanh.f32 %v1070_v27  ;;  %v1071_v15 = vadd.f32 %v2911_v23, %v719_v60  ;;  %v746_v23 = vmul.f32 %v2874_v0, %v3019_v59  ;;  %v745_v27 = vmul.f32 %v2876_v1, %v3019_v59  ;;  %v2287_v1 = vld [vmem:[%s3355_s4 + $0x1f] ss:$0 sm:$0xff] }
 0x10b   : > { %v3045_v61 = vpop.permute.xlu1 %1040  ;;  %v3047_v5 = vpop.permute.xlu0 %1036  ;;  %2363 = vtanh.f32 %v1069_v7  ;;  %v1073_v17 = vadd.f32 %v2926_v38, %v721_v22  ;;  %v723_v7 = vmul.f32 %v2766_v21, %v3019_v59 }
 0x10c   : > { %1879 = vperm.xlu1 %2356, %v2315_v3   ;;  %1875 = vperm.xlu0 %2355, %v2314_v11   ;;  %v722_v3 = vmul.f32 %v2754_v16, %v3019_v59  ;;  %2365 = vtanh.f32 %v1072_v14  ;;  %v2319_v16 = vld [vmem:[%s3356_s5 + $0x1f] ss:$0 sm:$0xff] }
 0x10d   : > { %2367 = vtanh.f32 %v1071_v15  ;;  %v1075_v21 = vadd.f32 %v2940_v51, %v723_v7  ;;  %v725_v15 = vmul.f32 %v2776_v25, %v3019_v59  ;;  %v728_v25 = vmul.f32 %v2784_v28, %v3019_v59 }
 0x10e   : > { %v1074_v9 = vadd.f32 %v2924_v35, %v722_v3  ;;  %v724_v35 = vmul.f32 %v2764_v20, %v3019_v59  ;;  %v2286_v20 = vld [vmem:[%s3355_s4 + $0x1e] ss:$0 sm:$0xff]  ;;  %v730_v28 = vmul.f32 %v2794_v32, %v3019_v59 }
 0x10f   : > { %v3061_v4 = vpop.permute.xlu1 %1048  ;;  %v3063_v47 = vpop.permute.xlu0 %1044 }
 0x110   : > { %1887 = vperm.xlu1 %2356, %v2317_v31   ;;  %1883 = vperm.xlu0 %2355, %v2316_v8   ;;  %2369 = vtanh.f32 %v1074_v9  ;;  %v1076_v0 = vadd.f32 %v2938_v50, %v724_v35 }
 0x111   : > { %v3110_v38 = vpop.eup %2357  ;;  %2371 = vtanh.f32 %v1073_v17  ;;  %v727_v17 = vmul.f32 %v2786_v29, %v3019_v59 }
 0x112   : > { %v3113_v14 = vpop.eup %2359  ;;  %2373 = vtanh.f32 %v1076_v0 }
 0x113   : > { %v3077_v13 = vpop.permute.xlu1 %1056  ;;  %v3079_v11 = vpop.permute.xlu0 %1052  ;;  %2375 = vtanh.f32 %v1075_v21 }
 0x114   : > { %1436 = vperm.xlu1 %2356, %v2284_v58   ;;  %1891 = vperm.xlu0 %2355, %v2318_v12   ;;  %v726_v58 = vmul.f32 %v2774_v24, %v3019_v59 }
 0x116   : > { %v1078_v9 = vadd.f32 %v2951_v62, %v726_v58 }
 0x117   : > { %v1065_v31 = vpop.permute.xlu1 %1064  ;;  %v1061_v8 = vpop.permute.xlu0 %1060 }
 0x118   : > { %v3099_v34 = vadd.f32 %v1065_v31, %v746_v23  ;;  %v3101_v60 = vadd.f32 %v1061_v8, %v745_v27  ;;  %1440 = vperm.xlu1 %2356, %v2285_v6   ;;  %1895 = vperm.xlu0 %2355, %v2319_v16   ;;  %v3122_v51 = vpop.eup %2361  ;;  %v1077_v6 = vadd.f32 %v2953_v63, %v725_v15  ;;  %2377 = vtanh.f32 %v1078_v9 }
 0x119   : > { %v3125_v16 = vpop.eup %2363  ;;  %v1080_v31 = vadd.f32 %v2962_v19, %v728_v25  ;;  %v1079_v63 = vadd.f32 %v2964_v26, %v727_v17  ;;  %v731_v9 = vmul.f32 %v2806_v37, %v3019_v59  ;;  %v734_v17 = vmul.f32 %v2814_v40, %v3019_v59 }
 0x11a   : > { %v3134_v8 = vpop.eup %2365  ;;  %2379 = vtanh.f32 %v1077_v6 }
 0x11b   : > { %v1329_v12 = vpop.permute.xlu1 %1328  ;;  %v1325_v50 = vpop.permute.xlu0 %1324  ;;  %2381 = vtanh.f32 %v1080_v31 }
 0x11c   : > { %v1452_v3 = vmul.f32 %v3110_v38, %v1329_v12  ;;  %v1451_v22 = vmul.f32 %v3113_v14, %v1325_v50  ;;  %1448 = vperm.xlu1 %2356, %v2287_v1   ;;  %1444 = vperm.xlu0 %2355, %v2286_v20   ;;  %v3137_v0 = vpop.eup %2367  ;;  %v729_v20 = vmul.f32 %v2796_v33, %v3019_v59  ;;  %2383 = vtanh.f32 %v1079_v63 }
 0x11d   : > { %v1082_v12 = vadd.f32 %v2973_v54, %v730_v28  ;;  %v3146_v26 = vpop.eup %2369 }
 0x11e   : > { %v1483_v24 = vadd.f32 %v1452_v3, %v1451_v22  ;;  %v1081_v50 = vadd.f32 %v2975_v55, %v729_v20  ;;  %v3149_v32 = vpop.eup %2371  ;;  %v732_v3 = vmul.f32 %v2804_v36, %v3019_v59 }
 0x11f   : > { %v1337_v23 = vpop.permute.xlu1 %1336  ;;  %v1333_v27 = vpop.permute.xlu0 %1332  ;;  %2385 = vtanh.f32 %v1082_v12 }
 0x120   : > { %v1454_v35 = vmul.f32 %v3122_v51, %v1337_v23  ;;  %v1453_v62 = vmul.f32 %v3125_v16, %v1333_v27  ;;  %v1084_v25 = vadd.f32 %v2987_v30, %v732_v3  ;;  %v3158_v55 = vpop.eup %2373  ;;  %2387 = vtanh.f32 %v1081_v50 }
 0x121   : > { %v1083_v23 = vadd.f32 %v2989_v43, %v731_v9  ;;  %v3161_v36 = vpop.eup %2375  ;;  %v738_v3 = vmul.f32 %v2834_v48, %v3019_v59 }
 0x122   : > { %v1484_v7 = vadd.f32 %v1483_v24, %v1453_v62  ;;  %v733_v62 = vmul.f32 %v2816_v41, %v3019_v59  ;;  %2389 = vtanh.f32 %v1084_v25 }
 0x123   : > { %v1345_v1 = vpop.permute.xlu1 %1344  ;;  %v1341_v29 = vpop.permute.xlu0 %1340  ;;  %2391 = vtanh.f32 %v1083_v23  ;;  %v740_v23 = vmul.f32 %v2844_v52, %v3019_v59 }
 0x124   : > { %v1456_v21 = vmul.f32 %v3134_v8, %v1345_v1  ;;  %v1455_v19 = vmul.f32 %v3137_v0, %v1341_v29  ;;  %v1485_v58 = vadd.f32 %v1484_v7, %v1454_v35  ;;  %v1086_v7 = vadd.f32 %v3003_v42, %v734_v17 }
 0x125   : > { %v3170_v43 = vpop.eup %2377  ;;  %v1085_v28 = vadd.f32 %v3005_v46, %v733_v62  ;;  %v736_v29 = vmul.f32 %v2824_v44, %v3019_v59  ;;  %v739_v17 = vmul.f32 %v2846_v53, %v3019_v59  ;;  %v1092_v62 = vadd.f32 %v3045_v61, %v740_v23 }
 0x126   : > { %v1486_v15 = vadd.f32 %v1485_v58, %v1455_v19  ;;  %2393 = vtanh.f32 %v1086_v7 }
 0x127   : > { %v1353_v33 = vpop.permute.xlu1 %1352  ;;  %v1349_v22 = vpop.permute.xlu0 %1348  ;;  %v1088_v12 = vadd.f32 %v3015_v18, %v736_v29  ;;  %2395 = vtanh.f32 %v1085_v28  ;;  %v741_v28 = vmul.f32 %v2856_v57, %v3019_v59 }
 0x128   : > { %v1458_v6 = vmul.f32 %v3146_v26, %v1353_v33  ;;  %v1457_v54 = vmul.f32 %v3149_v32, %v1349_v22  ;;  %v1487_v24 = vadd.f32 %v1486_v15, %v1456_v21  ;;  %v3173_v40 = vpop.eup %2379  ;;  %v735_v21 = vmul.f32 %v2826_v45, %v3019_v59 }
 0x129   : > { %v3182_v46 = vpop.eup %2381  ;;  %v737_v22 = vmul.f32 %v2836_v49, %v3019_v59  ;;  %2397 = vtanh.f32 %v1088_v12 }
 0x12a   : > { %v1488_v27 = vadd.f32 %v1487_v24, %v1457_v54  ;;  %v1087_v50 = vadd.f32 %v3017_v2, %v735_v21  ;;  %v3185_v44 = vpop.eup %2383  ;;  %v1090_v54 = vadd.f32 %v3029_v39, %v738_v3 }
 0x12b   : > { %v1361_v37 = vpop.permute.xlu1 %1360  ;;  %v1357_v35 = vpop.permute.xlu0 %1356  ;;  %v1089_v24 = vadd.f32 %v3031_v10, %v737_v22 }
 0x12c   : > { %v1460_v31 = vmul.f32 %v3158_v55, %v1361_v37  ;;  %v1459_v30 = vmul.f32 %v3161_v36, %v1357_v35  ;;  %v1489_v63 = vadd.f32 %v1488_v27, %v1458_v6  ;;  %v3194_v2 = vpop.eup %2385  ;;  %2399 = vtanh.f32 %v1087_v50 }
 0x12d   : > { %v3197_v48 = vpop.eup %2387  ;;  %2401 = vtanh.f32 %v1090_v54 }
 0x12e   : > { %v1490_v1 = vadd.f32 %v1489_v63, %v1459_v30  ;;  %2403 = vtanh.f32 %v1089_v24  ;;  %v742_v63 = vmul.f32 %v2854_v56, %v3019_v59 }
 0x12f   : > { %v1369_v41 = vpop.permute.xlu1 %1368  ;;  %v1365_v20 = vpop.permute.xlu0 %1364  ;;  %2405 = vtanh.f32 %v1092_v62 }
 0x130   : > { %v1462_v19 = vmul.f32 %v3170_v43, %v1369_v41  ;;  %v1461_v42 = vmul.f32 %v3173_v40, %v1365_v20  ;;  %v1491_v58 = vadd.f32 %v1490_v1, %v1460_v31  ;;  %v3206_v10 = vpop.eup %2389  ;;  %v1091_v31 = vadd.f32 %v3047_v5, %v739_v17 }
 0x131   : > { %v3209_v52 = vpop.eup %2391  ;;  %v1094_v41 = vadd.f32 %v3061_v4, %v742_v63  ;;  %v1093_v20 = vadd.f32 %v3063_v47, %v741_v28  ;;  %v1546_v28 = vmul.f32 %v3113_v14, %v3113_v14  ;;  %v1549_v14 = vmul.f32 %v3122_v51, %v3122_v51 }
 0x132   : > { %v1492_v15 = vadd.f32 %v1491_v58, %v1461_v42  ;;  %2407 = vtanh.f32 %v1091_v31  ;;  %v1552_v51 = vmul.f32 %v3149_v32, %v3149_v32  ;;  %v1555_v32 = vmul.f32 %v3158_v55, %v3158_v55 }
 0x133   : > { %v1377_v45 = vpop.permute.xlu1 %1376  ;;  %v1373_v33 = vpop.permute.xlu0 %1372  ;;  %2409 = vtanh.f32 %v1094_v41  ;;  %v1558_v55 = vmul.f32 %v3185_v44, %v3185_v44 }
 0x134   : > { %v1464_v9 = vmul.f32 %v3182_v46, %v1377_v45  ;;  %v1463_v18 = vmul.f32 %v3185_v44, %v1373_v33  ;;  %v1493_v6 = vadd.f32 %v1492_v15, %v1462_v19  ;;  %v3218_v5 = vpop.eup %2393  ;;  %2411 = vtanh.f32 %v1093_v20 }
 0x135   : > { %v3221_v56 = vpop.eup %2395  ;;  %v1561_v44 = vmul.f32 %v3194_v2, %v3194_v2 }
 0x136   : > { %v1494_v25 = vadd.f32 %v1493_v6, %v1463_v18  ;;  %v3225_v50 = vpop.eup %2397 }
 0x137   : > { %v1385_v49 = vpop.permute.xlu1 %1384  ;;  %v1381_v27 = vpop.permute.xlu0 %1380 }
 0x138   : > { %v1466_v37 = vmul.f32 %v3194_v2, %v1385_v49  ;;  %v1465_v39 = vmul.f32 %v3197_v48, %v1381_v27  ;;  %v1495_v35 = vadd.f32 %v1494_v25, %v1464_v9 }
 0x139   : > { %v3227_v15 = vpop.eup %2399 }
 0x13a   : > { %v1496_v30 = vadd.f32 %v1495_v35, %v1465_v39  ;;  %v3231_v9 = vpop.eup %2401 }
 0x13b   : > { %v1393_v53 = vpop.permute.xlu1 %1392  ;;  %v1389_v7 = vpop.permute.xlu0 %1388 }
 0x13c   : > { %v1468_v1 = vmul.f32 %v3206_v10, %v1393_v53  ;;  %v1467_v61 = vmul.f32 %v3209_v52, %v1389_v7  ;;  %v1497_v29 = vadd.f32 %v1496_v30, %v1466_v37  ;;  %v3233_v6 = vpop.eup %2403  ;;  %v1547_v7 = vmul.f32 %v3110_v38, %v3110_v38 }
 0x13d   : > { %v3237_v27 = vpop.eup %2405 }
 0x13e   : > { %v1498_v21 = vadd.f32 %v1497_v29, %v1467_v61 }
 0x13f   : > { %v1401_v19 = vpop.permute.xlu1 %1400  ;;  %v1397_v42 = vpop.permute.xlu0 %1396 }
 0x140   : > { %v1470_v57 = vmul.f32 %v3218_v5, %v1401_v19  ;;  %v1469_v58 = vmul.f32 %v3221_v56, %v1397_v42  ;;  %v1499_v12 = vadd.f32 %v1498_v21, %v1468_v1  ;;  %v3239_v37 = vpop.eup %2407  ;;  %v1579_v42 = vsub.f32 1.0, %v1547_v7 }
 0x141   : > { %v3243_v63 = vpop.eup %2409 }
 0x142   : > { %v1500_v4 = vadd.f32 %v1499_v12, %v1469_v58  ;;  %v3249_v1 = vpop.eup %2411  ;;  %v1548_v58 = vmul.f32 %v3125_v16, %v3125_v16  ;;  %v1551_v16 = vmul.f32 %v3134_v8, %v3134_v8  ;;  %v1554_v8 = vmul.f32 %v3161_v36, %v3161_v36 }
 0x143   : > { %v1409_v3 = vpop.permute.xlu1 %1408  ;;  %v1405_v45 = vpop.permute.xlu0 %1404  ;;  %v1557_v36 = vmul.f32 %v3170_v43, %v3170_v43  ;;  %v1560_v43 = vmul.f32 %v3197_v48, %v3197_v48  ;;  %v1593_v48 = vsub.f32 1.0, %v1561_v44 }
 0x144   : > { %v1472_v47 = vmul.f32 %v3225_v50, %v1409_v3  ;;  %v1471_v33 = vmul.f32 %v3227_v15, %v1405_v45  ;;  %v1501_v22 = vadd.f32 %v1500_v4, %v1470_v57  ;;  %v1578_v57 = vsub.f32 1.0, %v1546_v28 }
 0x145   : > { %v1584_v28 = vsub.f32 1.0, %v1552_v51 }
 0x146   : > { %v1502_v18 = vadd.f32 %v1501_v22, %v1471_v33  ;;  %v1580_v33 = vsub.f32 1.0, %v1548_v58  ;;  %v1550_v22 = vmul.f32 %v3137_v0, %v3137_v0  ;;  %v1553_v0 = vmul.f32 %v3146_v26, %v3146_v26 }
 0x147   : > { %v1417_v54 = vpop.permute.xlu1 %1416  ;;  %v1413_v24 = vpop.permute.xlu0 %1412  ;;  %v1556_v26 = vmul.f32 %v3173_v40, %v3173_v40  ;;  %v1559_v40 = vmul.f32 %v3182_v46, %v3182_v46  ;;  %v1592_v46 = vsub.f32 1.0, %v1560_v43 }
 0x148   : > { %v1474_v25 = vmul.f32 %v3231_v9, %v1417_v54  ;;  %v1473_v23 = vmul.f32 %v3233_v6, %v1413_v24  ;;  %v1503_v49 = vadd.f32 %v1502_v18, %v1472_v47  ;;  %v1581_v24 = vsub.f32 1.0, %v1549_v14 }
 0x14a   : > { %v1504_v17 = vadd.f32 %v1503_v49, %v1473_v23 }
 0x14b   : > { %v1425_v39 = vpop.permute.xlu1 %1424  ;;  %v1421_v35 = vpop.permute.xlu0 %1420 }
 0x14c   : > { %v1476_v62 = vmul.f32 %v3237_v27, %v1425_v39  ;;  %v1475_v31 = vmul.f32 %v3239_v37, %v1421_v35  ;;  %v1505_v30 = vadd.f32 %v1504_v17, %v1474_v25  ;;  %v1582_v17 = vsub.f32 1.0, %v1550_v22 }
 0x14e   : > { %v1506_v53 = vadd.f32 %v1505_v30, %v1475_v31 }
 0x14f   : > { %v1433_v61 = vpop.permute.xlu1 %1432  ;;  %v1429_v29 = vpop.permute.xlu0 %1428 }
 0x150   : > { %v1478_v41 = vmul.f32 %v3243_v63, %v1433_v61  ;;  %v1477_v20 = vmul.f32 %v3249_v1, %v1429_v29  ;;  %v1507_v21 = vadd.f32 %v1506_v53, %v1476_v62  ;;  %v1583_v62 = vsub.f32 1.0, %v1551_v16 }
 0x152   : > { %v1508_v19 = vadd.f32 %v1507_v21, %v1477_v20 }
 0x153   : > { %v1776_v12 = vpop.permute.xlu1 %1775  ;;  %v1772_v38 = vpop.permute.xlu0 %1771 }
 0x154   : > { %v1899_v4 = vmul.f32 %v1776_v12, %v1579_v42  ;;  %v1898_v3 = vmul.f32 %v1772_v38, %v1578_v57  ;;  %v3257_v45 = vadd.f32 %v1508_v19, %v1478_v41  ;;  %v1585_v41 = vsub.f32 1.0, %v1553_v0 }
 0x155   : > { %v1586_v57 = vsub.f32 1.0, %v1554_v8  ;;  %v1587_v38 = vsub.f32 1.0, %v1555_v32 }
 0x156   : > { %v1930_v47 = vadd.f32 %v1899_v4, %v1898_v3 }
 0x157   : > { %v1784_v18 = vpop.permute.xlu1 %1783  ;;  %v1780_v54 = vpop.permute.xlu0 %1779 }
 0x158   : > { %v1900_v25 = vmul.f32 %v1780_v54, %v1580_v33  ;;  %v1901_v23 = vmul.f32 %v1784_v18, %v1581_v24  ;;  %v1588_v33 = vsub.f32 1.0, %v1556_v26  ;;  %v1589_v54 = vsub.f32 1.0, %v1557_v36 }
 0x15a   : > { %v1931_v49 = vadd.f32 %v1930_v47, %v1900_v25 }
 0x15b   : > { %v1792_v39 = vpop.permute.xlu1 %1791  ;;  %v1788_v35 = vpop.permute.xlu0 %1787 }
 0x15c   : > { %v1902_v31 = vmul.f32 %v1788_v35, %v1582_v17  ;;  %v1932_v30 = vadd.f32 %v1931_v49, %v1901_v23  ;;  %v1903_v53 = vmul.f32 %v1792_v39, %v1583_v62  ;;  %v1590_v49 = vsub.f32 1.0, %v1558_v55 }
 0x15d   : > { %v1591_v39 = vsub.f32 1.0, %v1559_v40 }
 0x15e   : > { %v1933_v7 = vadd.f32 %v1932_v30, %v1902_v31  ;;  %v1562_v31 = vmul.f32 %v3209_v52, %v3209_v52 }
 0x15f   : > { %v1800_v61 = vpop.permute.xlu1 %1799  ;;  %v1796_v29 = vpop.permute.xlu0 %1795 }
 0x160   : > { %v1904_v20 = vmul.f32 %v1796_v29, %v1584_v28  ;;  %v1934_v21 = vadd.f32 %v1933_v7, %v1903_v53  ;;  %v1905_v19 = vmul.f32 %v1800_v61, %v1585_v41  ;;  %v3371_v53 = vld [vmem:[#allocation5_spill] sm:$0xff]  ;;  %v1563_v41 = vmul.f32 %v3206_v10, %v3206_v10 }
 0x161   : > { %v743_v7 = vmul.f32 %v3371_v53, %v3019_v59 }
 0x162   : > { %v1935_v42 = vadd.f32 %v1934_v21, %v1904_v20  ;;  %v3372_v20 = vld [vmem:[#allocation4_spill] sm:$0xff]  ;;  %v1594_v21 = vsub.f32 1.0, %v1562_v31 }
 0x163   : > { %v1808_v58 = vpop.permute.xlu1 %1807  ;;  %v1804_v12 = vpop.permute.xlu0 %1803  ;;  %v744_v2 = vmul.f32 %v3372_v20, %v3019_v59  ;;  %v1095_v52 = vadd.f32 %v3079_v11, %v743_v7  ;;  %v1566_v59 = vmul.f32 %v3227_v15, %v3227_v15  ;;  %v1568_v15 = vmul.f32 %v3233_v6, %v3233_v6 }
 0x164   : > { %v1906_v4 = vmul.f32 %v1804_v12, %v1586_v57  ;;  %v1936_v3 = vadd.f32 %v1935_v42, %v1905_v19  ;;  %v1907_v14 = vmul.f32 %v1808_v58, %v1587_v38  ;;  %v1564_v42 = vmul.f32 %v3221_v56, %v3221_v56 }
 0x165   : > { %v1565_v58 = vmul.f32 %v3218_v5, %v3218_v5  ;;  %v1096_v12 = vadd.f32 %v3077_v13, %v744_v2  ;;  %v1595_v38 = vsub.f32 1.0, %v1563_v41  ;;  %2413 = vtanh.f32 %v1095_v52 }
 0x166   : > { %v1937_v47 = vadd.f32 %v1936_v3, %v1906_v4  ;;  %v1596_v36 = vsub.f32 1.0, %v1564_v42  ;;  %v1567_v5 = vmul.f32 %v3225_v50, %v3225_v50  ;;  %v1598_v13 = vsub.f32 1.0, %v1566_v59 }
 0x167   : > { %v1816_v22 = vpop.permute.xlu1 %1815  ;;  %v1812_v18 = vpop.permute.xlu0 %1811  ;;  %2415 = vtanh.f32 %v1096_v12  ;;  %v1600_v43 = vsub.f32 1.0, %v1568_v15  ;;  %v3373_v59 = vlaneseq }
 0x168   : > { %v1908_v24 = vmul.f32 %v1812_v18, %v1588_v33  ;;  %v1938_v25 = vadd.f32 %v1937_v47, %v1907_v14  ;;  %v1909_v16 = vmul.f32 %v1816_v22, %v1589_v54  ;;  %v1597_v47 = vsub.f32 1.0, %v1565_v58 }
 0x169   : > { %2417 = vtanh.f32 %v3101_v60  ;;  %v1570_v60 = vmul.f32 %v3239_v37, %v3239_v37 }
 0x16a   : > { %v1939_v23 = vadd.f32 %v1938_v25, %v1908_v24  ;;  %v1599_v25 = vsub.f32 1.0, %v1567_v5  ;;  %2419 = vtanh.f32 %v3099_v34  ;;  %v1572_v34 = vmul.f32 %v3249_v1, %v3249_v1 }
 0x16b   : > { %v1824_v17 = vpop.permute.xlu1 %1823  ;;  %v1820_v51 = vpop.permute.xlu0 %1819 }
 0x16c   : > { %v1910_v35 = vmul.f32 %v1820_v51, %v1590_v49  ;;  %v1940_v62 = vadd.f32 %v1939_v23, %v1909_v16  ;;  %v1911_v30 = vmul.f32 %v1824_v17, %v1591_v39  ;;  %v1569_v23 = vmul.f32 %v3231_v9, %v3231_v9 }
 0x16e   : > { %v1941_v0 = vadd.f32 %v1940_v62, %v1910_v35  ;;  %v1601_v39 = vsub.f32 1.0, %v1569_v23  ;;  %v1571_v62 = vmul.f32 %v3237_v27, %v3237_v27  ;;  %v3374_v23 = vld [vmem:[#allocation6_spill] sm:$0xff] }
 0x16f   : > { %v1832_v28 = vpop.permute.xlu1 %1831  ;;  %v1828_v8 = vpop.permute.xlu0 %1827 }
 0x170   : > { %v1912_v61 = vmul.f32 %v1828_v8, %v1592_v46  ;;  %v1942_v29 = vadd.f32 %v1941_v0, %v1911_v30  ;;  %v1913_v32 = vmul.f32 %v1832_v28, %v1593_v48  ;;  %v1602_v30 = vsub.f32 1.0, %v1570_v60 }
 0x171   : > { %v1603_v53 = vsub.f32 1.0, %v1571_v62  ;;  %v1573_v28 = vmul.f32 %v3243_v63, %v3243_v63  ;;  %v3378_v62 = vld [vmem:[#allocation8_spill] sm:$0xff] }
 0x172   : > { %v1943_v19 = vadd.f32 %v1942_v29, %v1912_v61  ;;  %v2414_v9 = vpop.eup %2413  ;;  %v1604_v29 = vsub.f32 1.0, %v1572_v34 }
 0x173   : > { %v1840_v57 = vpop.permute.xlu1 %1839  ;;  %v1836_v26 = vpop.permute.xlu0 %1835  ;;  %v1574_v27 = vmul.f32 %v2414_v9, %v2414_v9 }
 0x174   : > { %v1914_v10 = vmul.f32 %v1836_v26, %v1594_v21  ;;  %v1944_v4 = vadd.f32 %v1943_v19, %v1913_v32  ;;  %v1915_v11 = vmul.f32 %v1840_v57, %v1595_v38  ;;  %v2416_v8 = vpop.eup %2415  ;;  %v1605_v21 = vsub.f32 1.0, %v1573_v28 }
 0x175   : > { %v1575_v32 = vmul.f32 %v2416_v8, %v2416_v8  ;;  %v1606_v26 = vsub.f32 1.0, %v1574_v27 }
 0x176   : > { %v1945_v3 = vadd.f32 %v1944_v4, %v1914_v10  ;;  %v2418_v41 = vpop.eup %2417 }
 0x177   : > { %v1848_v14 = vpop.permute.xlu1 %1847  ;;  %v1844_v56 = vpop.permute.xlu0 %1843  ;;  %v1576_v58 = vmul.f32 %v2418_v41, %v2418_v41  ;;  %v1607_v63 = vsub.f32 1.0, %v1575_v32 }
 0x178   : > { %v1916_v33 = vmul.f32 %v1844_v56, %v1596_v36  ;;  %v1946_v55 = vadd.f32 %v1945_v3, %v1915_v11  ;;  %v1917_v22 = vmul.f32 %v1848_v14, %v1597_v47  ;;  %v2420_v19 = vpop.eup %2419  ;;  %v1964_v11 = vand.u32 127, %v3373_v59 }
 0x179   : > { %v1608_v14 = vsub.f32 1.0, %v1576_v58  ;;  %v1577_v47 = vmul.f32 %v2420_v19, %v2420_v19 }
 0x17a   : > { %v1947_v18 = vadd.f32 %v1946_v55, %v1916_v33 }
 0x17b   : > { %v1856_v54 = vpop.permute.xlu1 %1855  ;;  %v1852_v24 = vpop.permute.xlu0 %1851 }
 0x17c   : > { %v1918_v40 = vmul.f32 %v1852_v24, %v1598_v13  ;;  %v1948_v16 = vadd.f32 %v1947_v18, %v1917_v22  ;;  %v1919_v49 = vmul.f32 %v1856_v54, %v1599_v25  ;;  %v1969_v22 = vand.u32 7, %v1964_v11 }
 0x17d   : > { %v1609_v54 = vsub.f32 1.0, %v1577_v47 }
 0x17e   : > { %v1949_v50 = vadd.f32 %v1948_v16, %v1918_v40  ;;  %vm3318_vm0 = vcmp.eq.s32.totalorder %v3374_v23, %v1969_v22 }
 0x17f   : > { %v1864_v17 = vpop.permute.xlu1 %1863  ;;  %v1860_v51 = vpop.permute.xlu0 %1859  ;;  %vm1978_vm2 = vmxor %vm3318_vm0, %vm2447_vm1 }
 0x180   : > { %v1920_v6 = vmul.f32 %v1860_v51, %v1600_v43  ;;  %v1950_v35 = vadd.f32 %v1949_v50, %v1919_v49  ;;  %v1921_v44 = vmul.f32 %v1864_v17, %v1601_v39 }
 0x182   : > { %v1951_v31 = vadd.f32 %v1950_v35, %v1920_v6  ;;  %v3377_v6 = vld [vmem:[#allocation7_spill] sm:$0xff] }
 0x183   : > { %v1872_v0 = vpop.permute.xlu1 %1871  ;;  %v1868_v46 = vpop.permute.xlu0 %1867 }
 0x184   : > { %v1922_v7 = vmul.f32 %v1868_v46, %v1602_v30  ;;  %v1952_v37 = vadd.f32 %v1951_v31, %v1921_v44  ;;  %v1923_v48 = vmul.f32 %v1872_v0, %v1603_v53  ;;  %v3379_v31 = vld [vmem:[#allocation9_spill] sm:$0xff] }
 0x186   : > { %v1953_v61 = vadd.f32 %v1952_v37, %v1922_v7 }
 0x187   : > { %v1880_v20 = vpop.permute.xlu1 %1879  ;;  %v1876_v2 = vpop.permute.xlu0 %1875 }
 0x188   : > { %v1924_v52 = vmul.f32 %v1876_v2, %v1604_v29  ;;  %v1954_v1 = vadd.f32 %v1953_v61, %v1923_v48  ;;  %v1925_v42 = vmul.f32 %v1880_v20, %v1605_v21 }
 0x18a   : > { %v1955_v57 = vadd.f32 %v1954_v1, %v1924_v52 }
 0x18b   : > { %v1888_v12 = vpop.permute.xlu1 %1887  ;;  %v1884_v38 = vpop.permute.xlu0 %1883 }
 0x18c   : > { %v1926_v10 = vmul.f32 %v1884_v38, %v1606_v26  ;;  %v1956_v4 = vadd.f32 %v1955_v57, %v1925_v42  ;;  %v1927_v3 = vmul.f32 %v1888_v12, %v1607_v63 }
 0x18e   : > { %v1957_v36 = vadd.f32 %v1956_v4, %v1926_v10 }
 0x18f   : > { %v1437_v56 = vpop.permute.xlu1 %1436  ;;  %v1892_v33 = vpop.permute.xlu0 %1891 }
 0x190   : > { %v1479_v55 = vmul.f32 %v2414_v9, %v1437_v56  ;;  %v1928_v5 = vmul.f32 %v1892_v33, %v1608_v14  ;;  %v1958_v13 = vadd.f32 %v1957_v36, %v1927_v3  ;;  %v2448_v9 = vmov 0.0  }
 0x191   : > { %v2320_v0 = vsel %vm1978_vm2, 1.0, %v2448_v9  ;;  %v2321_v26 = vsel %vm3318_vm0, 1.0, %v2448_v9 }
 0x192   : > { %v1510_v18 = vadd.f32 %v3257_v45, %v1479_v55  ;;  %v1959_v15 = vadd.f32 %v1958_v13, %v1928_v5 }
 0x193   : > { %v1441_v24 = vpop.permute.xlu1 %1440  ;;  %v1896_v25 = vpop.permute.xlu0 %1895 }
 0x194   : > { %v1480_v40 = vmul.f32 %v2416_v8, %v1441_v24  ;;  %v1929_v16 = vmul.f32 %v1896_v25, %v1609_v54 }
 0x196   : > { %v1511_v50 = vadd.f32 %v1510_v18, %v1480_v40  ;;  %v1960_v43 = vadd.f32 %v1959_v15, %v1929_v16 }
 0x197   : > { %v1449_v60 = vpop.permute.xlu1 %1448  ;;  %v1445_v17 = vpop.permute.xlu0 %1444 }
 0x198   : > { %v1990_v51 = vmul.f32 2.0, %v1960_v43  ;;  %v1481_v39 = vmul.f32 %v2418_v41, %v1445_v17  ;;  %v1482_v45 = vmul.f32 %v2420_v19, %v1449_v60 }
 0x19a   : > { %v1991_v35 = vmul.f32 %v1990_v51, %v3377_v6  ;;  %v1992_v44 = vmul.f32 %v1990_v51, %v3378_v62  ;;  %v1993_v30 = vmul.f32 %v1990_v51, %v3379_v31  ;;  %v1512_v34 = vadd.f32 %v1511_v50, %v1481_v39 }
 0x19c   : > { %v1994_v46 = vrot.slane %v1991_v35, 4  ;;  %v2000_v53 = vrot.slane %v1992_v44, 4  ;;  %v2006_v7 = vrot.slane %v1993_v30, 4  ;;  %v1513_v37 = vadd.f32 %v1512_v34, %v1482_v45 }
 0x19e   : > { %v1995_v28 = vadd.f32 %v1994_v46, %v1991_v35  ;;  %v2001_v8 = vadd.f32 %v2000_v53, %v1992_v44  ;;  %v2007_v48 = vadd.f32 %v2006_v7, %v1993_v30  ;;  %v1983_v61 = vmul.f32 %v2320_v0, %v1513_v37 }
 0x1a0   : > { %v1996_v29 = vrot.slane %v1995_v28, 2  ;;  %v2002_v27 = vrot.slane %v2001_v8, 2  ;;  %v2008_v41 = vrot.slane %v2007_v48, 2  ;;  %v1984_v20 = vrot.slane %v1983_v61, 4 }
 0x1a2   : > { %v1997_v2 = vadd.f32 %v1996_v29, %v1995_v28  ;;  %v2003_v21 = vadd.f32 %v2002_v27, %v2001_v8  ;;  %v2009_v52 = vadd.f32 %v2008_v41, %v2007_v48  ;;  %v1985_v1 = vadd.f32 %v1984_v20, %v1983_v61 }
 0x1a4   : > { %v1986_v32 = vrot.slane %v1985_v1, 2  ;;  %v1998_v19 = vrot.slane %v1997_v2, 1  ;;  %v2004_v42 = vrot.slane %v2003_v21, 1  ;;  %v2010_v57 = vrot.slane %v2009_v52, 1 }
 0x1a6   : > { %v1987_v58 = vadd.f32 %v1986_v32, %v1985_v1  ;;  %v1999_v12 = vadd.f32 %v1998_v19, %v1997_v2  ;;  %v2005_v38 = vadd.f32 %v2004_v42, %v2003_v21  ;;  %v2011_v63 = vadd.f32 %v2010_v57, %v2009_v52 }
 0x1a8   : > { %v1988_v10 = vrot.slane %v1987_v58, 1  ;;  %v2012_v4 = vmul.f32 %v2321_v26, %v1999_v12  ;;  %v2013_v59 = vmul.f32 %v2321_v26, %v2005_v38  ;;  %v2014_v11 = vmul.f32 %v2321_v26, %v2011_v63 }
 0x1a9   : > { %v2022_v3 = vmul.f32 -2.0, %v1999_v12  ;;  %v2023_v36 = vmul.f32 -2.0, %v2005_v38  ;;  %v2024_v14 = vmul.f32 -2.0, %v2011_v63 }
 0x1aa   : > { %v1989_v47 = vadd.f32 %v1988_v10, %v1987_v58  ;;  %v2015_v56 = vsub.f32 %v1991_v35, %v2012_v4  ;;  %v2016_v33 = vsub.f32 %v1992_v44, %v2013_v59  ;;  %v2017_v55 = vsub.f32 %v1993_v30, %v2014_v11  ;;  %2044 = sbr.rel (!%p2520_p5) target bundleno = 438 (0x1b6), region = 86 }
 0x1ab   : > { %v2029_v5 = vsel %vm2028_vm3, %v2023_v36, %v2022_v3 }
 0x1ac   : > { %2018 = vst [vmem:[%s329_s19] sm:$0xff] %v2015_v56  ;;  %2019 = vst [vmem:[%s329_s19 + $0x8] sm:$0xff] %v2016_v33  ;;  %v2031_v13 = vsel %vm2030_vm4, %v2024_v14, %v2029_v5 }
 0x1ad   : > { %2020 = vst [vmem:[%s329_s19 + $0x10] sm:$0xff] %v2017_v55  ;;  %2021 = vst [vmem:[%s343_s18] sm:$0x1] %v1989_v47 }
 0x1ae   : > { %2033 = vst [vmem:[%s343_s18 + $0x1] sm:$0x7] %v2031_v13 }
 0x1b3   : > { %v2079_v22 = vld [vmem:[%s329_s19] sm:$0xff]  ;;  %v2081_v18 = vld [vmem:[%s329_s19 + $0x8] sm:$0xff] }
 0x1b4   : > { %v2083_v15 = vld [vmem:[%s329_s19 + $0x10] sm:$0xff]  ;;  %2080 = vst [vmem:[%s2046_s21] sm:$0xff] %v2079_v22  ;;  %2082 = vst [vmem:[%s2046_s21 + $0x10] sm:$0xff] %v2081_v18 }
 0x1b5   : > { %2084 = vst [vmem:[%s2046_s21 + $0x20] sm:$0xff] %v2083_v15 }
 0x1b6 PF: > { %p15_p11 = scmp.ge.s32.totalorder %s2508_s28, 4   ;;  %s3380_s24 = smov %s2439_s25 }
 0x1b7   : > { %s3381_s25 = smov %s2518_s8  ;;  %s3382_s26 = smov %s2508_s28 }
 0x1b8   :  { %17 = sbr.rel (!%p15_p11) target bundleno = 2 (0x2), region = 170 }

</bundles_post_ra>
